<compile_context>
chip_gen: v7x
topology: tpu7x:2x2x1
jax: 0.10.0
libtpu: 0.0.40
codegen_flags: <defaults>
</compile_context>

<pallas_src>
import functools

import jax
import jax.numpy as jnp
from jax.experimental import pallas as pl
from jax.experimental.pallas import tpu as pltpu


def _round_up(x, m):
    return (x + m - 1) // m * m


def _device_cfg():
    """(tm_cap, vmem_limit_bytes) per TPU generation."""
    try:
        kind = jax.devices()[0].device_kind.lower()
    except Exception:  # pragma: no cover - backend probing only
        kind = ""
    if ("v5" in kind) or ("v6" in kind):
        return 1024, 64 * 1024 * 1024          # 128 MiB physical VMEM
    return 512, 32 * 1024 * 1024               # v7x: 64 MiB per TC -> conservative


_TM_CAP, _VMEM_LIMIT = _device_cfg()


def _cparams(*sem):
    return pltpu.CompilerParams(dimension_semantics=sem,
                                vmem_limit_bytes=_VMEM_LIMIT)


# ------------------------- fused conv kernels (main path) ------------------ #
# 4x4 stride-2 pad-1 conv == 2x2 stride-1 conv on the 2x2 space-to-depth of
# the padded input.  Per batch image the s2d tensor is flattened to
# (Sr8, 4*Cin) rows (row = a*(Wo+1)+c, with one phantom output column wo==Wo);
# tap (di, dj) of the 2x2 window is the contiguous row window starting at
# offset di*(Wo+1)+dj of length Me = Ho*(Wo+1).

def _fused_conv_lrelu_kernel(s_ref, w_ref, o_ref, *, ho, wo, neg_slope):
    """One image per grid step: in-VMEM im2col + accumulated MXU GEMM + LReLU."""
    me = ho * (wo + 1)
    cp = o_ref.shape[-1]
    acc = jnp.zeros((me, cp), jnp.float32)
    for t, off in enumerate((0, 1, wo + 1, wo + 2)):        # taps (di, dj)
        acc = acc + jnp.dot(s_ref[0, off:off + me, :], w_ref[t],
                            preferred_element_type=jnp.float32)
    o_ref[0] = jnp.maximum(acc, neg_slope * acc).astype(o_ref.dtype)


def _fused_conv_bn_lrelu_kernel(s_ref, w_ref, g_ref, b_ref, o_ref, *,
                                batch, ho, wo, eps, neg_slope):
    """Whole Conv+BN+LeakyReLU layer in one invocation (y never leaves VMEM).

    BatchNorm uses training-mode batch statistics with a mean-centered
    (cancellation-safe) variance; phantom wo==Wo rows are masked out.
    """
    me = ho * (wo + 1)
    cp = o_ref.shape[-1]
    offs = (0, 1, wo + 1, wo + 2)
    row = jax.lax.broadcasted_iota(jnp.int32, (me, cp), 0)
    valid = (row % (wo + 1)) != wo
    n = float(batch * ho * wo)

    ys = []
    tot = jnp.zeros((1, cp), jnp.float32)
    for b in range(batch):
        acc = jnp.zeros((me, cp), jnp.float32)
        for t, off in enumerate(offs):
            acc = acc + jnp.dot(s_ref[b, off:off + me, :], w_ref[t],
                                preferred_element_type=jnp.float32)
        ys.append(acc)
        tot = tot + jnp.sum(jnp.where(valid, acc, 0.0), axis=0, keepdims=True)
    mean = tot / n

    var = jnp.zeros((1, cp), jnp.float32)
    for b in range(batch):
        d = jnp.where(valid, ys[b] - mean, 0.0)
        var = var + jnp.sum(d * d, axis=0, keepdims=True)
    var = var / n

    scale = g_ref[...] * jax.lax.rsqrt(var + eps)
    shift = b_ref[...] - mean * scale
    for b in range(batch):
        y = ys[b] * scale + shift
        o_ref[b] = jnp.maximum(y, neg_slope * y).astype(o_ref.dtype)


# -------------------- fallback kernels (large-shape escape hatch) ---------- #

def _gemm_lrelu_kernel(p_ref, w_ref, o_ref, *, neg_slope):
    y = jnp.dot(p_ref[...], w_ref[...], preferred_element_type=jnp.float32)
    o_ref[...] = jnp.maximum(y, neg_slope * y).astype(o_ref.dtype)


def _gemm_stats_kernel(p_ref, w_ref, y_ref, st_ref):
    """GEMM + per-tile per-channel (sum, sumsq) packed in one (8, Cp) block."""
    y = jnp.dot(p_ref[...], w_ref[...], preferred_element_type=jnp.float32)
    y_ref[...] = y.astype(y_ref.dtype)                      # bf16 intermediate
    st_ref[...] = jnp.zeros_like(st_ref)
    st_ref[0:1, :] = jnp.sum(y, axis=0, keepdims=True)
    st_ref[1:2, :] = jnp.sum(y * y, axis=0, keepdims=True)


def _bn_lrelu_kernel(y_ref, sc_ref, sh_ref, o_ref, *, neg_slope):
    y = y_ref[...].astype(jnp.float32) * sc_ref[...] + sh_ref[...]
    o_ref[...] = jnp.maximum(y, neg_slope * y).astype(o_ref.dtype)


# ------------------------------- JAX glue ----------------------------------- #

def _space_to_depth(x_nhwc):
    """pad-1 + 2x2 space-to-depth, flattened per image to (Sr8, 4*Cin) bf16."""
    b, h, w, c = x_nhwc.shape
    ho, wo = h // 2, w // 2
    xp = jnp.pad(x_nhwc, ((0, 0), (1, 1), (1, 1), (0, 0)))
    s = xp.reshape(b, ho + 1, 2, wo + 1, 2, c)
    s = s.transpose(0, 1, 3, 2, 4, 5).reshape(b, (ho + 1) * (wo + 1), 4 * c)
    sr8 = _round_up((ho + 1) * (wo + 1) + 1, 8)   # +1 row: last tap's last window
    s = jnp.pad(s, ((0, 0), (0, sr8 - (ho + 1) * (wo + 1)), (0, 0)))
    return s.astype(jnp.bfloat16), ho, wo, sr8


def _conv_weight_taps(w, cp):
    """(Cout, Cin, 4, 4) -> (4 taps, 4*Cin, Cp) bf16 matching the s2d layout."""
    cout, cin, _, _ = w.shape
    w6 = w.reshape(cout, cin, 2, 2, 2, 2)          # (co, ci, di, pi, dj, pj)
    w3 = w6.transpose(2, 4, 3, 5, 1, 0).reshape(4, 4 * cin, cout)
    return jnp.pad(w3, ((0, 0), (0, 0), (0, cp - cout))).astype(jnp.bfloat16)


def _strip(out, b, ho, wo, cout, cp):
    # Phantom column / padded channels are dropped here; under jit this slice
    # fuses into the next layer's pad + space-to-depth relayout.
    return out.reshape(b, ho, wo + 1, cp)[:, :, :wo, :cout]


def conv_lrelu(x_nhwc, w, *, neg_slope=0.2):
    b, _, _, c = x_nhwc.shape
    cout = w.shape[0]
    cp = _round_up(cout, 128)
    s, ho, wo, sr8 = _space_to_depth(x_nhwc)
    me = ho * (wo + 1)
    est = (2 * sr8 * 4 * c * 2 + 2 * 16 * c * cp * 2 + 2 * me * cp * 2
           + me * cp * 4 + 4 * me * 4 * c * 2)
    if est <= _VMEM_LIMIT // 2:
        wt = _conv_weight_taps(w, cp)
        out = pl.pallas_call(
            functools.partial(_fused_conv_lrelu_kernel,
                              ho=ho, wo=wo, neg_slope=neg_slope),
            out_shape=jax.ShapeDtypeStruct((b, me, cp), jnp.bfloat16),
            grid=(b,),                                   # >= 2 steps -> megacore
            in_specs=[pl.BlockSpec((1, sr8, 4 * c), lambda i: (i, 0, 0)),
                      pl.BlockSpec((4, 4 * c, cp), lambda i: (0, 0, 0))],
            out_specs=pl.BlockSpec((1, me, cp), lambda i: (i, 0, 0)),
            compiler_params=_cparams("parallel"),
        )(s, wt)
        return _strip(out, b, ho, wo, cout, cp)
    return _conv_lrelu_big(x_nhwc, w, neg_slope=neg_slope)


def conv_bn_lrelu(x_nhwc, w, gamma, beta, *, eps=1e-5, neg_slope=0.2):
    b, _, _, c = x_nhwc.shape
    cout = w.shape[0]
    cp = _round_up(cout, 128)
    s, ho, wo, sr8 = _space_to_depth(x_nhwc)
    me = ho * (wo + 1)
    est = (b * sr8 * 4 * c * 2 + 16 * c * cp * 2 + b * me * cp * 2
           + 2 * b * me * cp * 4)
    if est <= _VMEM_LIMIT // 2:
        wt = _conv_weight_taps(w, cp)
        g = jnp.pad(gamma.astype(jnp.float32), (0, cp - cout)).reshape(1, cp)
        bt = jnp.pad(beta.astype(jnp.float32), (0, cp - cout)).reshape(1, cp)
        out = pl.pallas_call(
            functools.partial(_fused_conv_bn_lrelu_kernel, batch=b, ho=ho,
                              wo=wo, eps=eps, neg_slope=neg_slope),
            out_shape=jax.ShapeDtypeStruct((b, me, cp), jnp.bfloat16),
            grid=(1,),            # batch stats serialize -> single grid step
            in_specs=[pl.BlockSpec((b, sr8, 4 * c), lambda i: (0, 0, 0)),
                      pl.BlockSpec((4, 4 * c, cp), lambda i: (0, 0, 0)),
                      pl.BlockSpec((1, cp), lambda i: (0, 0)),
                      pl.BlockSpec((1, cp), lambda i: (0, 0))],
            out_specs=pl.BlockSpec((b, me, cp), lambda i: (0, 0, 0)),
            compiler_params=_cparams("arbitrary"),
        )(s, wt, g, bt)
        return _strip(out, b, ho, wo, cout, cp)
    return _conv_bn_lrelu_big(x_nhwc, w, gamma, beta, eps=eps,
                              neg_slope=neg_slope)


# ------------------------- fallback (materialized im2col) ------------------ #

def _im2col_nhwc(x, ksize, stride, pad, dtype=jnp.bfloat16):
    b, h, w, c = x.shape
    hout = (h + 2 * pad - ksize) // stride + 1
    wout = (w + 2 * pad - ksize) // stride + 1
    xp = jnp.pad(x, ((0, 0), (pad, pad), (pad, pad), (0, 0)))
    cols = []
    for ki in range(ksize):
        for kj in range(ksize):
            cols.append(xp[:, ki:ki + stride * hout:stride,
                           kj:kj + stride * wout:stride, :])
    patches = jnp.stack(cols, axis=3)
    patches = patches.reshape(b * hout * wout, ksize * ksize * c)
    return patches.astype(dtype), (b, hout, wout)


def _prep_gemm(x_nhwc, w, tm_cap):
    cout = w.shape[0]
    patches, (b, ho, wo) = _im2col_nhwc(x_nhwc, 4, 2, 1)
    m, k = patches.shape
    kp = _round_up(k, 128)                              # lane-align K
    tm = min(tm_cap, _round_up(pl.cdiv(m, 2), 8))       # >= 2 grid steps
    m_pad = _round_up(m, tm)
    patches = jnp.pad(patches, ((0, m_pad - m), (0, kp - k)))
    cp = _round_up(cout, 128)
    w2 = jnp.pad(w.transpose(2, 3, 1, 0).reshape(k, cout),
                 ((0, kp - k), (0, cp - cout))).astype(jnp.bfloat16)
    return patches, w2, (b, ho, wo, m, cout, cp, tm)


def _conv_lrelu_big(x_nhwc, w, *, neg_slope=0.2):
    patches, w2, (b, ho, wo, m, cout, cp, tm) = _prep_gemm(x_nhwc, w, _TM_CAP)
    m_pad, kp = patches.shape
    y = pl.pallas_call(
        functools.partial(_gemm_lrelu_kernel, neg_slope=neg_slope),
        out_shape=jax.ShapeDtypeStruct((m_pad, cp), jnp.bfloat16),
        grid=(m_pad // tm,),
        in_specs=[pl.BlockSpec((tm, kp), lambda i: (i, 0)),
                  pl.BlockSpec((kp, cp), lambda i: (0, 0))],
        out_specs=pl.BlockSpec((tm, cp), lambda i: (i, 0)),
        compiler_params=_cparams("parallel"),
    )(patches, w2)
    return y[:m, :cout].reshape(b, ho, wo, cout)


def _conv_bn_lrelu_big(x_nhwc, w, gamma, beta, *, eps=1e-5, neg_slope=0.2):
    patches, w2, (b, ho, wo, m, cout, cp, tm) = _prep_gemm(x_nhwc, w, _TM_CAP)
    m_pad, kp = patches.shape
    nt = m_pad // tm
    y, st = pl.pallas_call(
        _gemm_stats_kernel,
        out_shape=(jax.ShapeDtypeStruct((m_pad, cp), jnp.bfloat16),
                   jax.ShapeDtypeStruct((nt * 8, cp), jnp.float32)),
        grid=(nt,),
        in_specs=[pl.BlockSpec((tm, kp), lambda i: (i, 0)),
                  pl.BlockSpec((kp, cp), lambda i: (0, 0))],
        out_specs=(pl.BlockSpec((tm, cp), lambda i: (i, 0)),
                   pl.BlockSpec((8, cp), lambda i: (i, 0))),
        compiler_params=_cparams("parallel"),
    )(patches, w2)
    st = st.reshape(nt, 8, cp)
    tot, tot_sq = st[:, 0, :].sum(axis=0), st[:, 1, :].sum(axis=0)
    mean = tot / m                       # zero-padded M rows contribute zero
    var = jnp.maximum(tot_sq / m - mean * mean, 0.0)
    g = jnp.pad(gamma.astype(jnp.float32), (0, cp - cout))
    bt = jnp.pad(beta.astype(jnp.float32), (0, cp - cout))
    scale = (g * jax.lax.rsqrt(var + eps)).reshape(1, cp)
    shift = (bt - mean * scale[0]).reshape(1, cp)
    out = pl.pallas_call(
        functools.partial(_bn_lrelu_kernel, neg_slope=neg_slope),
        out_shape=jax.ShapeDtypeStruct((m_pad, cp), jnp.bfloat16),
        grid=(nt,),
        in_specs=[pl.BlockSpec((tm, cp), lambda i: (i, 0)),
                  pl.BlockSpec((1, cp), lambda i: (0, 0)),
                  pl.BlockSpec((1, cp), lambda i: (0, 0))],
        out_specs=pl.BlockSpec((tm, cp), lambda i: (i, 0)),
        compiler_params=_cparams("parallel"),
    )(y, scale, shift)
    return out[:m, :cout].reshape(b, ho, wo, cout)


# --------------------------------- model ------------------------------------ #

class Discriminator:
    """Mirror of the PyTorch module (bias-free convs, BN in training mode)."""

    def __init__(self, nz, ndf, nc, num_classes=10, key=jax.random.PRNGKey(0)):
        del nz  # unused, as in the PyTorch module
        ks = jax.random.split(key, 5)
        self.num_classes = num_classes
        # nn.Embedding default init: N(0, 1)
        self.label_emb = jax.random.normal(ks[0], (num_classes, num_classes),
                                           jnp.float32)
        cin0 = nc + num_classes
        self.w1 = 0.02 * jax.random.normal(ks[1], (ndf, cin0, 4, 4), jnp.float32)
        self.w2 = 0.02 * jax.random.normal(ks[2], (ndf * 2, ndf, 4, 4), jnp.float32)
        self.w3 = 0.02 * jax.random.normal(ks[3], (ndf * 4, ndf * 2, 4, 4), jnp.float32)
        self.w4 = 0.02 * jax.random.normal(ks[4], (1, ndf * 4, 4, 4), jnp.float32)
        self.g2 = jnp.ones((ndf * 2,), jnp.float32)
        self.b2 = jnp.zeros((ndf * 2,), jnp.float32)
        self.g3 = jnp.ones((ndf * 4,), jnp.float32)
        self.b3 = jnp.zeros((ndf * 4,), jnp.float32)

    def __call__(self, x, labels):
        B, _, H, W = x.shape
        # NCHW -> NHWC once at the model boundary; channel-last thereafter.
        x_nhwc = jnp.transpose(x.astype(jnp.float32), (0, 2, 3, 1))
        emb = jnp.take(self.label_emb, labels, axis=0)            # (B, ncls)
        lab = jnp.broadcast_to(emb[:, None, None, :],
                               (B, H, W, self.num_classes))
        d_input = jnp.concatenate([x_nhwc, lab], axis=-1)         # (B,H,W,nc+ncls)

        h = conv_lrelu(d_input, self.w1)                          # (B,H/2,W/2,ndf)
        h = conv_bn_lrelu(h, self.w2, self.g2, self.b2)           # (B,H/4,W/4,2ndf)
        h = conv_bn_lrelu(h, self.w3, self.g3, self.b3)           # (B,H/8,W/8,4ndf)

        # Final 4x4/s2 conv (Cout=1) + sigmoid as a plain dot in the wrapper.
        patches, _ = _im2col_nhwc(h, 4, 2, 1, dtype=jnp.float32)
        w4 = self.w4.transpose(2, 3, 1, 0).reshape(-1, 1).astype(jnp.float32)
        logits = patches @ w4                                     # (M4, 1)
        return jax.nn.sigmoid(logits)


if __name__ == "__main__":
    key = jax.random.PRNGKey(0)
    kx, kl, kp = jax.random.split(key, 3)

    B, nc, H, W = 2, 1, 16, 16
    ndf, num_classes = 16, 10

    x = jax.random.normal(kx, (B, nc, H, W), jnp.float32)
    labels = jax.random.randint(kl, (B,), 0, num_classes, jnp.int32)

    disc = Discriminator(nz=100, ndf=ndf, nc=nc, num_classes=num_classes, key=kp)
    fwd = jax.jit(lambda xx, ll: disc(xx, ll))
    out = jax.block_until_ready(fwd(x, labels))

    assert out.shape == (B * (H // 16) * (W // 16), 1)
    assert bool(jnp.all(jnp.isfinite(out)))
    assert bool(jnp.all((out >= 0.0) & (out <= 1.0)))
    print("KERNEL_OK")
</pallas_src>

<mosaic_0001>
module attributes {stable_mosaic.version = 11 : i64} {
  func.func @_fused_conv_lrelu_kernel(%arg0: i32, %arg1: memref<1x88x44xbf16, #tpu.memory_space<vmem>>, %arg2: memref<4x44x128xbf16, #tpu.memory_space<vmem>>, %arg3: memref<1x72x128xbf16, #tpu.memory_space<vmem>>) attributes {dimension_semantics = [#tpu.dimension_semantics<parallel>], iteration_bounds = array<i64: 2>, scalar_prefetch = 0 : i64, scratch_operands = 0 : i64, tpu.core_type = #tpu.core_type<tc>, window_params = [{transform_indices = @transform_0, window_bounds = array<i64: 1, 88, 44>}, {pipeline_mode = #tpu.pipeline_mode<synchronous>, transform_indices = @transform_1, window_bounds = array<i64: 4, 44, 128>}, {transform_indices = @transform_2, window_bounds = array<i64: 1, 72, 128>}]} {
    %cst = arith.constant 0.000000e+00 : f32
    %0 = vector.broadcast %cst : f32 to vector<72x128xf32>
    %c0 = arith.constant 0 : index
    %c0_0 = arith.constant 0 : index
    %c0_1 = arith.constant 0 : index
    %1 = vector.load %arg1[%c0, %c0_0, %c0_1] : memref<1x88x44xbf16, #tpu.memory_space<vmem>>, vector<1x72x44xbf16>
    %2 = vector.shape_cast %1 : vector<1x72x44xbf16> to vector<72x44xbf16>
    %c0_2 = arith.constant 0 : index
    %c0_3 = arith.constant 0 : index
    %c0_4 = arith.constant 0 : index
    %3 = vector.load %arg2[%c0_2, %c0_3, %c0_4] : memref<4x44x128xbf16, #tpu.memory_space<vmem>>, vector<1x44x128xbf16>
    %4 = vector.shape_cast %3 : vector<1x44x128xbf16> to vector<44x128xbf16>
    %cst_5 = arith.constant dense<0.000000e+00> : vector<72x128xf32>
    %5 = tpu.matmul %2, %4, %cst_5 {dimension_numbers = #tpu.dot_dimension_numbers<[1], [0], [0], [1], [0, 0, 1, 1], [], []>} : vector<72x44xbf16>, vector<44x128xbf16>, vector<72x128xf32> -> vector<72x128xf32>
    %6 = arith.addf %0, %5 : vector<72x128xf32>
    %c0_6 = arith.constant 0 : index
    %c1 = arith.constant 1 : index
    %c0_7 = arith.constant 0 : index
    %7 = vector.load %arg1[%c0_6, %c1, %c0_7] : memref<1x88x44xbf16, #tpu.memory_space<vmem>>, vector<1x72x44xbf16>
    %8 = vector.shape_cast %7 : vector<1x72x44xbf16> to vector<72x44xbf16>
    %c1_8 = arith.constant 1 : index
    %c0_9 = arith.constant 0 : index
    %c0_10 = arith.constant 0 : index
    %9 = vector.load %arg2[%c1_8, %c0_9, %c0_10] : memref<4x44x128xbf16, #tpu.memory_space<vmem>>, vector<1x44x128xbf16>
    %10 = vector.shape_cast %9 : vector<1x44x128xbf16> to vector<44x128xbf16>
    %cst_11 = arith.constant dense<0.000000e+00> : vector<72x128xf32>
    %11 = tpu.matmul %8, %10, %cst_11 {dimension_numbers = #tpu.dot_dimension_numbers<[1], [0], [0], [1], [0, 0, 1, 1], [], []>} : vector<72x44xbf16>, vector<44x128xbf16>, vector<72x128xf32> -> vector<72x128xf32>
    %12 = arith.addf %6, %11 : vector<72x128xf32>
    %c0_12 = arith.constant 0 : index
    %c9 = arith.constant 9 : index
    %c0_13 = arith.constant 0 : index
    %13 = vector.load %arg1[%c0_12, %c9, %c0_13] : memref<1x88x44xbf16, #tpu.memory_space<vmem>>, vector<1x72x44xbf16>
    %14 = vector.shape_cast %13 : vector<1x72x44xbf16> to vector<72x44xbf16>
    %c2 = arith.constant 2 : index
    %c0_14 = arith.constant 0 : index
    %c0_15 = arith.constant 0 : index
    %15 = vector.load %arg2[%c2, %c0_14, %c0_15] : memref<4x44x128xbf16, #tpu.memory_space<vmem>>, vector<1x44x128xbf16>
    %16 = vector.shape_cast %15 : vector<1x44x128xbf16> to vector<44x128xbf16>
    %cst_16 = arith.constant dense<0.000000e+00> : vector<72x128xf32>
    %17 = tpu.matmul %14, %16, %cst_16 {dimension_numbers = #tpu.dot_dimension_numbers<[1], [0], [0], [1], [0, 0, 1, 1], [], []>} : vector<72x44xbf16>, vector<44x128xbf16>, vector<72x128xf32> -> vector<72x128xf32>
    %18 = arith.addf %12, %17 : vector<72x128xf32>
    %c0_17 = arith.constant 0 : index
    %c10 = arith.constant 10 : index
    %c0_18 = arith.constant 0 : index
    %19 = vector.load %arg1[%c0_17, %c10, %c0_18] : memref<1x88x44xbf16, #tpu.memory_space<vmem>>, vector<1x72x44xbf16>
    %20 = vector.shape_cast %19 : vector<1x72x44xbf16> to vector<72x44xbf16>
    %c3 = arith.constant 3 : index
    %c0_19 = arith.constant 0 : index
    %c0_20 = arith.constant 0 : index
    %21 = vector.load %arg2[%c3, %c0_19, %c0_20] : memref<4x44x128xbf16, #tpu.memory_space<vmem>>, vector<1x44x128xbf16>
    %22 = vector.shape_cast %21 : vector<1x44x128xbf16> to vector<44x128xbf16>
    %cst_21 = arith.constant dense<0.000000e+00> : vector<72x128xf32>
    %23 = tpu.matmul %20, %22, %cst_21 {dimension_numbers = #tpu.dot_dimension_numbers<[1], [0], [0], [1], [0, 0, 1, 1], [], []>} : vector<72x44xbf16>, vector<44x128xbf16>, vector<72x128xf32> -> vector<72x128xf32>
    %24 = arith.addf %18, %23 : vector<72x128xf32>
    %cst_22 = arith.constant 2.000000e-01 : f32
    %25 = vector.broadcast %cst_22 : f32 to vector<72x128xf32>
    %26 = arith.mulf %25, %24 : vector<72x128xf32>
    %27 = arith.maximumf %24, %26 : vector<72x128xf32>
    %28 = arith.truncf %27 : vector<72x128xf32> to vector<72x128xbf16>
    %c0_23 = arith.constant 0 : index
    %c0_24 = arith.constant 0 : index
    %c0_25 = arith.constant 0 : index
    %29 = vector.load %arg3[%c0_23, %c0_24, %c0_25] : memref<1x72x128xbf16, #tpu.memory_space<vmem>>, vector<1x72x128xbf16>
    %30 = vector.shape_cast %29 : vector<1x72x128xbf16> to vector<72x128xbf16>
    %31 = vector.shape_cast %28 : vector<72x128xbf16> to vector<1x72x128xbf16>
    tpu.vector_store %arg3[%c0_23, %c0_24, %c0_25], %31 {strides = array<i32>} : memref<1x72x128xbf16, #tpu.memory_space<vmem>>, vector<1x72x128xbf16>,
    return
  }
  func.func @transform_0(%arg0: i32) -> (i32, i32, i32) {
    %c0_i32 = arith.constant 0 : i32
    %c0_i32_0 = arith.constant 0 : i32
    %c0_i32_1 = arith.constant 0 : i32
    return %arg0, %c0_i32, %c0_i32_0 : i32, i32, i32
  }
  func.func @transform_1(%arg0: i32) -> (i32, i32, i32) {
    %c0_i32 = arith.constant 0 : i32
    %c0_i32_0 = arith.constant 0 : i32
    %c0_i32_1 = arith.constant 0 : i32
    %c0_i32_2 = arith.constant 0 : i32
    return %c0_i32, %c0_i32_0, %c0_i32_1 : i32, i32, i32
  }
  func.func @transform_2(%arg0: i32) -> (i32, i32, i32) {
    %c0_i32 = arith.constant 0 : i32
    %c0_i32_0 = arith.constant 0 : i32
    %c0_i32_1 = arith.constant 0 : i32
    return %arg0, %c0_i32, %c0_i32_0 : i32, i32, i32
  }
}

module attributes {stable_mosaic.version = 11 : i64} {
  func.func @_fused_conv_bn_lrelu_kernel(%arg0: i32, %arg1: memref<2x32x64xbf16, #tpu.memory_space<vmem>>, %arg2: memref<4x64x128xbf16, #tpu.memory_space<vmem>>, %arg3: memref<1x128xf32, #tpu.memory_space<vmem>>, %arg4: memref<1x128xf32, #tpu.memory_space<vmem>>, %arg5: memref<2x20x128xbf16, #tpu.memory_space<vmem>>) attributes {dimension_semantics = [#tpu.dimension_semantics<arbitrary>], iteration_bounds = array<i64: 1>, scalar_prefetch = 0 : i64, scratch_operands = 0 : i64, tpu.core_type = #tpu.core_type<tc>, window_params = [{pipeline_mode = #tpu.pipeline_mode<synchronous>, transform_indices = @transform_0, window_bounds = array<i64: 2, 32, 64>}, {pipeline_mode = #tpu.pipeline_mode<synchronous>, transform_indices = @transform_1, window_bounds = array<i64: 4, 64, 128>}, {pipeline_mode = #tpu.pipeline_mode<synchronous>, transform_indices = @transform_2, window_bounds = array<i64: 1, 128>}, {pipeline_mode = #tpu.pipeline_mode<synchronous>, transform_indices = @transform_3, window_bounds = array<i64: 1, 128>}, {pipeline_mode = #tpu.pipeline_mode<synchronous>, transform_indices = @transform_4, window_bounds = array<i64: 2, 20, 128>}]} {
    %0 = tpu.iota {dimensions = array<i32: 0>} : vector<20x128xi32>
    %c5_i32 = arith.constant 5 : i32
    %c0_i32 = arith.constant 0 : i32
    %1 = arith.cmpi eq, %c5_i32, %c0_i32 : i32
    %c1_i32 = arith.constant 1 : i32
    %2 = arith.select %1, %c1_i32, %c5_i32 : i32
    %3 = vector.broadcast %2 : i32 to vector<20x128xi32>
    %4 = arith.remsi %0, %3 : vector<20x128xi32>
    %c0_i32_0 = arith.constant 0 : i32
    %5 = vector.broadcast %c0_i32_0 : i32 to vector<20x128xi32>
    %6 = arith.cmpi ne, %4, %5 : vector<20x128xi32>
    %c0_i32_1 = arith.constant 0 : i32
    %7 = vector.broadcast %c0_i32_1 : i32 to vector<20x128xi32>
    %8 = arith.cmpi slt, %4, %7 : vector<20x128xi32>
    %c0_i32_2 = arith.constant 0 : i32
    %9 = arith.cmpi slt, %2, %c0_i32_2 : i32
    %10 = vector.broadcast %9 : i1 to vector<20x128xi1>
    %11 = vector.broadcast %10 : vector<20x128xi1> to vector<20x128xi1>
    %12 = arith.xori %8, %11 : vector<20x128xi1>
    %13 = arith.andi %12, %6 : vector<20x128xi1>
    %14 = vector.broadcast %2 : i32 to vector<20x128xi32>
    %15 = arith.addi %4, %14 : vector<20x128xi32>
    %16 = arith.select %13, %15, %4 : vector<20x128xi1>, vector<20x128xi32>
    %c4_i32 = arith.constant 4 : i32
    %17 = vector.broadcast %c4_i32 : i32 to vector<20x128xi32>
    %18 = arith.cmpi ne, %16, %17 : vector<20x128xi32>
    %cst = arith.constant 0.000000e+00 : f32
    %19 = vector.broadcast %cst : f32 to vector<1x128xf32>
    %cst_3 = arith.constant 0.000000e+00 : f32
    %20 = vector.broadcast %cst_3 : f32 to vector<20x128xf32>
    %c0 = arith.constant 0 : index
    %c0_4 = arith.constant 0 : index
    %c0_5 = arith.constant 0 : index
    %21 = vector.load %arg1[%c0, %c0_4, %c0_5] : memref<2x32x64xbf16, #tpu.memory_space<vmem>>, vector<1x20x64xbf16>
    %22 = vector.shape_cast %21 : vector<1x20x64xbf16> to vector<20x64xbf16>
    %c0_6 = arith.constant 0 : index
    %c0_7 = arith.constant 0 : index
    %c0_8 = arith.constant 0 : index
    %23 = vector.load %arg2[%c0_6, %c0_7, %c0_8] : memref<4x64x128xbf16, #tpu.memory_space<vmem>>, vector<1x64x128xbf16>
    %24 = vector.shape_cast %23 : vector<1x64x128xbf16> to vector<64x128xbf16>
    %cst_9 = arith.constant dense<0.000000e+00> : vector<20x128xf32>
    %25 = tpu.matmul %22, %24, %cst_9 {dimension_numbers = #tpu.dot_dimension_numbers<[1], [0], [0], [1], [0, 0, 1, 1], [], []>} : vector<20x64xbf16>, vector<64x128xbf16>, vector<20x128xf32> -> vector<20x128xf32>
    %26 = arith.addf %20, %25 : vector<20x128xf32>
    %c0_10 = arith.constant 0 : index
    %c1 = arith.constant 1 : index
    %c0_11 = arith.constant 0 : index
    %27 = vector.load %arg1[%c0_10, %c1, %c0_11] : memref<2x32x64xbf16, #tpu.memory_space<vmem>>, vector<1x20x64xbf16>
    %28 = vector.shape_cast %27 : vector<1x20x64xbf16> to vector<20x64xbf16>
    %c1_12 = arith.constant 1 : index
    %c0_13 = arith.constant 0 : index
    %c0_14 = arith.constant 0 : index
    %29 = vector.load %arg2[%c1_12, %c0_13, %c0_14] : memref<4x64x128xbf16, #tpu.memory_space<vmem>>, vector<1x64x128xbf16>
    %30 = vector.shape_cast %29 : vector<1x64x128xbf16> to vector<64x128xbf16>
    %cst_15 = arith.constant dense<0.000000e+00> : vector<20x128xf32>
    %31 = tpu.matmul %28, %30, %cst_15 {dimension_numbers = #tpu.dot_dimension_numbers<[1], [0], [0], [1], [0, 0, 1, 1], [], []>} : vector<20x64xbf16>, vector<64x128xbf16>, vector<20x128xf32> -> vector<20x128xf32>
    %32 = arith.addf %26, %31 : vector<20x128xf32>
    %c0_16 = arith.constant 0 : index
    %c5 = arith.constant 5 : index
    %c0_17 = arith.constant 0 : index
    %33 = vector.load %arg1[%c0_16, %c5, %c0_17] : memref<2x32x64xbf16, #tpu.memory_space<vmem>>, vector<1x20x64xbf16>
    %34 = vector.shape_cast %33 : vector<1x20x64xbf16> to vector<20x64xbf16>
    %c2 = arith.constant 2 : index
    %c0_18 = arith.constant 0 : index
    %c0_19 = arith.constant 0 : index
    %35 = vector.load %arg2[%c2, %c0_18, %c0_19] : memref<4x64x128xbf16, #tpu.memory_space<vmem>>, vector<1x64x128xbf16>
    %36 = vector.shape_cast %35 : vector<1x64x128xbf16> to vector<64x128xbf16>
    %cst_20 = arith.constant dense<0.000000e+00> : vector<20x128xf32>
    %37 = tpu.matmul %34, %36, %cst_20 {dimension_numbers = #tpu.dot_dimension_numbers<[1], [0], [0], [1], [0, 0, 1, 1], [], []>} : vector<20x64xbf16>, vector<64x128xbf16>, vector<20x128xf32> -> vector<20x128xf32>
    %38 = arith.addf %32, %37 : vector<20x128xf32>
    %c0_21 = arith.constant 0 : index
    %c6 = arith.constant 6 : index
    %c0_22 = arith.constant 0 : index
    %39 = vector.load %arg1[%c0_21, %c6, %c0_22] : memref<2x32x64xbf16, #tpu.memory_space<vmem>>, vector<1x20x64xbf16>
    %40 = vector.shape_cast %39 : vector<1x20x64xbf16> to vector<20x64xbf16>
    %c3 = arith.constant 3 : index
    %c0_23 = arith.constant 0 : index
    %c0_24 = arith.constant 0 : index
    %41 = vector.load %arg2[%c3, %c0_23, %c0_24] : memref<4x64x128xbf16, #tpu.memory_space<vmem>>, vector<1x64x128xbf16>
    %42 = vector.shape_cast %41 : vector<1x64x128xbf16> to vector<64x128xbf16>
    %cst_25 = arith.constant dense<0.000000e+00> : vector<20x128xf32>
    %43 = tpu.matmul %40, %42, %cst_25 {dimension_numbers = #tpu.dot_dimension_numbers<[1], [0], [0], [1], [0, 0, 1, 1], [], []>} : vector<20x64xbf16>, vector<64x128xbf16>, vector<20x128xf32> -> vector<20x128xf32>
    %44 = arith.addf %38, %43 : vector<20x128xf32>
    %cst_26 = arith.constant 0.000000e+00 : f32
    %45 = vector.broadcast %cst_26 : f32 to vector<20x128xf32>
    %46 = arith.select %18, %44, %45 : vector<20x128xi1>, vector<20x128xf32>
    %cst_27 = arith.constant dense<0.000000e+00> : vector<128xf32>
    %47 = vector.multi_reduction <add>, %46, %cst_27 [0] : vector<20x128xf32> to vector<128xf32>
    %48 = vector.shape_cast %47 : vector<128xf32> to vector<1x128xf32>
    %49 = arith.addf %19, %48 : vector<1x128xf32>
    %cst_28 = arith.constant 0.000000e+00 : f32
    %50 = vector.broadcast %cst_28 : f32 to vector<20x128xf32>
    %c1_29 = arith.constant 1 : index
    %c0_30 = arith.constant 0 : index
    %c0_31 = arith.constant 0 : index
    %51 = vector.load %arg1[%c1_29, %c0_30, %c0_31] : memref<2x32x64xbf16, #tpu.memory_space<vmem>>, vector<1x20x64xbf16>
    %52 = vector.shape_cast %51 : vector<1x20x64xbf16> to vector<20x64xbf16>
    %c0_32 = arith.constant 0 : index
    %c0_33 = arith.constant 0 : index
    %c0_34 = arith.constant 0 : index
    %53 = vector.load %arg2[%c0_32, %c0_33, %c0_34] : memref<4x64x128xbf16, #tpu.memory_space<vmem>>, vector<1x64x128xbf16>
    %54 = vector.shape_cast %53 : vector<1x64x128xbf16> to vector<64x128xbf16>
    %cst_35 = arith.constant dense<0.000000e+00> : vector<20x128xf32>
    %55 = tpu.matmul %52, %54, %cst_35 {dimension_numbers = #tpu.dot_dimension_numbers<[1], [0], [0], [1], [0, 0, 1, 1], [], []>} : vector<20x64xbf16>, vector<64x128xbf16>, vector<20x128xf32> -> vector<20x128xf32>
    %56 = arith.addf %50, %55 : vector<20x128xf32>
    %c1_36 = arith.constant 1 : index
    %c1_37 = arith.constant 1 : index
    %c0_38 = arith.constant 0 : index
    %57 = vector.load %arg1[%c1_36, %c1_37, %c0_38] : memref<2x32x64xbf16, #tpu.memory_space<vmem>>, vector<1x20x64xbf16>
    %58 = vector.shape_cast %57 : vector<1x20x64xbf16> to vector<20x64xbf16>
    %c1_39 = arith.constant 1 : index
    %c0_40 = arith.constant 0 : index
    %c0_41 = arith.constant 0 : index
    %59 = vector.load %arg2[%c1_39, %c0_40, %c0_41] : memref<4x64x128xbf16, #tpu.memory_space<vmem>>, vector<1x64x128xbf16>
    %60 = vector.shape_cast %59 : vector<1x64x128xbf16> to vector<64x128xbf16>
    %cst_42 = arith.constant dense<0.000000e+00> : vector<20x128xf32>
    %61 = tpu.matmul %58, %60, %cst_42 {dimension_numbers = #tpu.dot_dimension_numbers<[1], [0], [0], [1], [0, 0, 1, 1], [], []>} : vector<20x64xbf16>, vector<64x128xbf16>, vector<20x128xf32> -> vector<20x128xf32>
    %62 = arith.addf %56, %61 : vector<20x128xf32>
    %c1_43 = arith.constant 1 : index
    %c5_44 = arith.constant 5 : index
    %c0_45 = arith.constant 0 : index
    %63 = vector.load %arg1[%c1_43, %c5_44, %c0_45] : memref<2x32x64xbf16, #tpu.memory_space<vmem>>, vector<1x20x64xbf16>
    %64 = vector.shape_cast %63 : vector<1x20x64xbf16> to vector<20x64xbf16>
    %c2_46 = arith.constant 2 : index
    %c0_47 = arith.constant 0 : index
    %c0_48 = arith.constant 0 : index
    %65 = vector.load %arg2[%c2_46, %c0_47, %c0_48] : memref<4x64x128xbf16, #tpu.memory_space<vmem>>, vector<1x64x128xbf16>
    %66 = vector.shape_cast %65 : vector<1x64x128xbf16> to vector<64x128xbf16>
    %cst_49 = arith.constant dense<0.000000e+00> : vector<20x128xf32>
    %67 = tpu.matmul %64, %66, %cst_49 {dimension_numbers = #tpu.dot_dimension_numbers<[1], [0], [0], [1], [0, 0, 1, 1], [], []>} : vector<20x64xbf16>, vector<64x128xbf16>, vector<20x128xf32> -> vector<20x128xf32>
    %68 = arith.addf %62, %67 : vector<20x128xf32>
    %c1_50 = arith.constant 1 : index
    %c6_51 = arith.constant 6 : index
    %c0_52 = arith.constant 0 : index
    %69 = vector.load %arg1[%c1_50, %c6_51, %c0_52] : memref<2x32x64xbf16, #tpu.memory_space<vmem>>, vector<1x20x64xbf16>
    %70 = vector.shape_cast %69 : vector<1x20x64xbf16> to vector<20x64xbf16>
    %c3_53 = arith.constant 3 : index
    %c0_54 = arith.constant 0 : index
    %c0_55 = arith.constant 0 : index
    %71 = vector.load %arg2[%c3_53, %c0_54, %c0_55] : memref<4x64x128xbf16, #tpu.memory_space<vmem>>, vector<1x64x128xbf16>
    %72 = vector.shape_cast %71 : vector<1x64x128xbf16> to vector<64x128xbf16>
    %cst_56 = arith.constant dense<0.000000e+00> : vector<20x128xf32>
    %73 = tpu.matmul %70, %72, %cst_56 {dimension_numbers = #tpu.dot_dimension_numbers<[1], [0], [0], [1], [0, 0, 1, 1], [], []>} : vector<20x64xbf16>, vector<64x128xbf16>, vector<20x128xf32> -> vector<20x128xf32>
    %74 = arith.addf %68, %73 : vector<20x128xf32>
    %cst_57 = arith.constant 0.000000e+00 : f32
    %75 = vector.broadcast %cst_57 : f32 to vector<20x128xf32>
    %76 = arith.select %18, %74, %75 : vector<20x128xi1>, vector<20x128xf32>
    %cst_58 = arith.constant dense<0.000000e+00> : vector<128xf32>
    %77 = vector.multi_reduction <add>, %76, %cst_58 [0] : vector<20x128xf32> to vector<128xf32>
    %78 = vector.shape_cast %77 : vector<128xf32> to vector<1x128xf32>
    %79 = arith.addf %49, %78 : vector<1x128xf32>
    %cst_59 = arith.constant 3.200000e+01 : f32
    %80 = vector.broadcast %cst_59 : f32 to vector<1x128xf32>
    %81 = arith.divf %79, %80 : vector<1x128xf32>
    %cst_60 = arith.constant 0.000000e+00 : f32
    %82 = vector.broadcast %cst_60 : f32 to vector<1x128xf32>
    %83 = vector.broadcast %81 : vector<1x128xf32> to vector<20x128xf32>
    %84 = arith.subf %44, %83 : vector<20x128xf32>
    %cst_61 = arith.constant 0.000000e+00 : f32
    %85 = vector.broadcast %cst_61 : f32 to vector<20x128xf32>
    %86 = arith.select %18, %84, %85 : vector<20x128xi1>, vector<20x128xf32>
    %87 = arith.mulf %86, %86 : vector<20x128xf32>
    %cst_62 = arith.constant dense<0.000000e+00> : vector<128xf32>
    %88 = vector.multi_reduction <add>, %87, %cst_62 [0] : vector<20x128xf32> to vector<128xf32>
    %89 = vector.shape_cast %88 : vector<128xf32> to vector<1x128xf32>
    %90 = arith.addf %82, %89 : vector<1x128xf32>
    %91 = vector.broadcast %81 : vector<1x128xf32> to vector<20x128xf32>
    %92 = arith.subf %74, %91 : vector<20x128xf32>
    %cst_63 = arith.constant 0.000000e+00 : f32
    %93 = vector.broadcast %cst_63 : f32 to vector<20x128xf32>
    %94 = arith.select %18, %92, %93 : vector<20x128xi1>, vector<20x128xf32>
    %95 = arith.mulf %94, %94 : vector<20x128xf32>
    %cst_64 = arith.constant dense<0.000000e+00> : vector<128xf32>
    %96 = vector.multi_reduction <add>, %95, %cst_64 [0] : vector<20x128xf32> to vector<128xf32>
    %97 = vector.shape_cast %96 : vector<128xf32> to vector<1x128xf32>
    %98 = arith.addf %90, %97 : vector<1x128xf32>
    %cst_65 = arith.constant 3.200000e+01 : f32
    %99 = vector.broadcast %cst_65 : f32 to vector<1x128xf32>
    %100 = arith.divf %98, %99 : vector<1x128xf32>
    %c0_66 = arith.constant 0 : index
    %c0_67 = arith.constant 0 : index
    %101 = vector.load %arg3[%c0_66, %c0_67] : memref<1x128xf32, #tpu.memory_space<vmem>>, vector<1x128xf32>
    %cst_68 = arith.constant 9.99999974E-6 : f32
    %102 = vector.broadcast %cst_68 : f32 to vector<1x128xf32>
    %103 = arith.addf %100, %102 : vector<1x128xf32>
    %104 = math.rsqrt %103 : vector<1x128xf32>
    %105 = arith.mulf %101, %104 : vector<1x128xf32>
    %c0_69 = arith.constant 0 : index
    %c0_70 = arith.constant 0 : index
    %106 = vector.load %arg4[%c0_69, %c0_70] : memref<1x128xf32, #tpu.memory_space<vmem>>, vector<1x128xf32>
    %107 = arith.mulf %81, %105 : vector<1x128xf32>
    %108 = arith.subf %106, %107 : vector<1x128xf32>
    %109 = vector.broadcast %105 : vector<1x128xf32> to vector<20x128xf32>
    %110 = arith.mulf %44, %109 : vector<20x128xf32>
    %111 = vector.broadcast %108 : vector<1x128xf32> to vector<20x128xf32>
    %112 = arith.addf %110, %111 : vector<20x128xf32>
    %cst_71 = arith.constant 2.000000e-01 : f32
    %113 = vector.broadcast %cst_71 : f32 to vector<20x128xf32>
    %114 = arith.mulf %113, %112 : vector<20x128xf32>
    %115 = arith.maximumf %112, %114 : vector<20x128xf32>
    %116 = arith.truncf %115 : vector<20x128xf32> to vector<20x128xbf16>
    %c0_72 = arith.constant 0 : index
    %c0_73 = arith.constant 0 : index
    %c0_74 = arith.constant 0 : index
    %117 = vector.load %arg5[%c0_72, %c0_73, %c0_74] : memref<2x20x128xbf16, #tpu.memory_space<vmem>>, vector<1x20x128xbf16>
    %118 = vector.shape_cast %117 : vector<1x20x128xbf16> to vector<20x128xbf16>
    %119 = vector.shape_cast %116 : vector<20x128xbf16> to vector<1x20x128xbf16>
    tpu.vector_store %arg5[%c0_72, %c0_73, %c0_74], %119 {strides = array<i32>} : memref<2x20x128xbf16, #tpu.memory_space<vmem>>, vector<1x20x128xbf16>,
    %120 = vector.broadcast %105 : vector<1x128xf32> to vector<20x128xf32>
    %121 = arith.mulf %74, %120 : vector<20x128xf32>
    %122 = vector.broadcast %108 : vector<1x128xf32> to vector<20x128xf32>
    %123 = arith.addf %121, %122 : vector<20x128xf32>
    %cst_75 = arith.constant 2.000000e-01 : f32
    %124 = vector.broadcast %cst_75 : f32 to vector<20x128xf32>
    %125 = arith.mulf %124, %123 : vector<20x128xf32>
    %126 = arith.maximumf %123, %125 : vector<20x128xf32>
    %127 = arith.truncf %126 : vector<20x128xf32> to vector<20x128xbf16>
    %c1_76 = arith.constant 1 : index
    %c0_77 = arith.constant 0 : index
    %c0_78 = arith.constant 0 : index
    %128 = vector.load %arg5[%c1_76, %c0_77, %c0_78] : memref<2x20x128xbf16, #tpu.memory_space<vmem>>, vector<1x20x128xbf16>
    %129 = vector.shape_cast %128 : vector<1x20x128xbf16> to vector<20x128xbf16>
    %130 = vector.shape_cast %127 : vector<20x128xbf16> to vector<1x20x128xbf16>
    tpu.vector_store %arg5[%c1_76, %c0_77, %c0_78], %130 {strides = array<i32>} : memref<2x20x128xbf16, #tpu.memory_space<vmem>>, vector<1x20x128xbf16>,
    return
  }
  func.func @transform_0(%arg0: i32) -> (i32, i32, i32) {
    %c0_i32 = arith.constant 0 : i32
    %c0_i32_0 = arith.constant 0 : i32
    %c0_i32_1 = arith.constant 0 : i32
    %c0_i32_2 = arith.constant 0 : i32
    return %c0_i32, %c0_i32_0, %c0_i32_1 : i32, i32, i32
  }
  func.func @transform_1(%arg0: i32) -> (i32, i32, i32) {
    %c0_i32 = arith.constant 0 : i32
    %c0_i32_0 = arith.constant 0 : i32
    %c0_i32_1 = arith.constant 0 : i32
    %c0_i32_2 = arith.constant 0 : i32
    return %c0_i32, %c0_i32_0, %c0_i32_1 : i32, i32, i32
  }
  func.func @transform_2(%arg0: i32) -> (i32, i32) {
    %c0_i32 = arith.constant 0 : i32
    %c0_i32_0 = arith.constant 0 : i32
    %c0_i32_1 = arith.constant 0 : i32
    return %c0_i32, %c0_i32_0 : i32, i32
  }
  func.func @transform_3(%arg0: i32) -> (i32, i32) {
    %c0_i32 = arith.constant 0 : i32
    %c0_i32_0 = arith.constant 0 : i32
    %c0_i32_1 = arith.constant 0 : i32
    return %c0_i32, %c0_i32_0 : i32, i32
  }
  func.func @transform_4(%arg0: i32) -> (i32, i32, i32) {
    %c0_i32 = arith.constant 0 : i32
    %c0_i32_0 = arith.constant 0 : i32
    %c0_i32_1 = arith.constant 0 : i32
    %c0_i32_2 = arith.constant 0 : i32
    return %c0_i32, %c0_i32_0, %c0_i32_1 : i32, i32, i32
  }
}

module attributes {stable_mosaic.version = 11 : i64} {
  func.func @_fused_conv_bn_lrelu_kernel(%arg0: i32, %arg1: memref<2x16x128xbf16, #tpu.memory_space<vmem>>, %arg2: memref<4x128x128xbf16, #tpu.memory_space<vmem>>, %arg3: memref<1x128xf32, #tpu.memory_space<vmem>>, %arg4: memref<1x128xf32, #tpu.memory_space<vmem>>, %arg5: memref<2x6x128xbf16, #tpu.memory_space<vmem>>) attributes {dimension_semantics = [#tpu.dimension_semantics<arbitrary>], iteration_bounds = array<i64: 1>, scalar_prefetch = 0 : i64, scratch_operands = 0 : i64, tpu.core_type = #tpu.core_type<tc>, window_params = [{pipeline_mode = #tpu.pipeline_mode<synchronous>, transform_indices = @transform_0, window_bounds = array<i64: 2, 16, 128>}, {pipeline_mode = #tpu.pipeline_mode<synchronous>, transform_indices = @transform_1, window_bounds = array<i64: 4, 128, 128>}, {pipeline_mode = #tpu.pipeline_mode<synchronous>, transform_indices = @transform_2, window_bounds = array<i64: 1, 128>}, {pipeline_mode = #tpu.pipeline_mode<synchronous>, transform_indices = @transform_3, window_bounds = array<i64: 1, 128>}, {pipeline_mode = #tpu.pipeline_mode<synchronous>, transform_indices = @transform_4, window_bounds = array<i64: 2, 6, 128>}]} {
    %0 = tpu.iota {dimensions = array<i32: 0>} : vector<6x128xi32>
    %c3_i32 = arith.constant 3 : i32
    %c0_i32 = arith.constant 0 : i32
    %1 = arith.cmpi eq, %c3_i32, %c0_i32 : i32
    %c1_i32 = arith.constant 1 : i32
    %2 = arith.select %1, %c1_i32, %c3_i32 : i32
    %3 = vector.broadcast %2 : i32 to vector<6x128xi32>
    %4 = arith.remsi %0, %3 : vector<6x128xi32>
    %c0_i32_0 = arith.constant 0 : i32
    %5 = vector.broadcast %c0_i32_0 : i32 to vector<6x128xi32>
    %6 = arith.cmpi ne, %4, %5 : vector<6x128xi32>
    %c0_i32_1 = arith.constant 0 : i32
    %7 = vector.broadcast %c0_i32_1 : i32 to vector<6x128xi32>
    %8 = arith.cmpi slt, %4, %7 : vector<6x128xi32>
    %c0_i32_2 = arith.constant 0 : i32
    %9 = arith.cmpi slt, %2, %c0_i32_2 : i32
    %10 = vector.broadcast %9 : i1 to vector<6x128xi1>
    %11 = vector.broadcast %10 : vector<6x128xi1> to vector<6x128xi1>
    %12 = arith.xori %8, %11 : vector<6x128xi1>
    %13 = arith.andi %12, %6 : vector<6x128xi1>
    %14 = vector.broadcast %2 : i32 to vector<6x128xi32>
    %15 = arith.addi %4, %14 : vector<6x128xi32>
    %16 = arith.select %13, %15, %4 : vector<6x128xi1>, vector<6x128xi32>
    %c2_i32 = arith.constant 2 : i32
    %17 = vector.broadcast %c2_i32 : i32 to vector<6x128xi32>
    %18 = arith.cmpi ne, %16, %17 : vector<6x128xi32>
    %cst = arith.constant 0.000000e+00 : f32
    %19 = vector.broadcast %cst : f32 to vector<1x128xf32>
    %cst_3 = arith.constant 0.000000e+00 : f32
    %20 = vector.broadcast %cst_3 : f32 to vector<6x128xf32>
    %c0 = arith.constant 0 : index
    %c0_4 = arith.constant 0 : index
    %c0_5 = arith.constant 0 : index
    %21 = vector.load %arg1[%c0, %c0_4, %c0_5] : memref<2x16x128xbf16, #tpu.memory_space<vmem>>, vector<1x6x128xbf16>
    %22 = vector.shape_cast %21 : vector<1x6x128xbf16> to vector<6x128xbf16>
    %c0_6 = arith.constant 0 : index
    %c0_7 = arith.constant 0 : index
    %c0_8 = arith.constant 0 : index
    %23 = vector.load %arg2[%c0_6, %c0_7, %c0_8] : memref<4x128x128xbf16, #tpu.memory_space<vmem>>, vector<1x128x128xbf16>
    %24 = vector.shape_cast %23 : vector<1x128x128xbf16> to vector<128x128xbf16>
    %cst_9 = arith.constant dense<0.000000e+00> : vector<6x128xf32>
    %25 = tpu.matmul %22, %24, %cst_9 {dimension_numbers = #tpu.dot_dimension_numbers<[1], [0], [0], [1], [0, 0, 1, 1], [], []>} : vector<6x128xbf16>, vector<128x128xbf16>, vector<6x128xf32> -> vector<6x128xf32>
    %26 = arith.addf %20, %25 : vector<6x128xf32>
    %c0_10 = arith.constant 0 : index
    %c1 = arith.constant 1 : index
    %c0_11 = arith.constant 0 : index
    %27 = vector.load %arg1[%c0_10, %c1, %c0_11] : memref<2x16x128xbf16, #tpu.memory_space<vmem>>, vector<1x6x128xbf16>
    %28 = vector.shape_cast %27 : vector<1x6x128xbf16> to vector<6x128xbf16>
    %c1_12 = arith.constant 1 : index
    %c0_13 = arith.constant 0 : index
    %c0_14 = arith.constant 0 : index
    %29 = vector.load %arg2[%c1_12, %c0_13, %c0_14] : memref<4x128x128xbf16, #tpu.memory_space<vmem>>, vector<1x128x128xbf16>
    %30 = vector.shape_cast %29 : vector<1x128x128xbf16> to vector<128x128xbf16>
    %cst_15 = arith.constant dense<0.000000e+00> : vector<6x128xf32>
    %31 = tpu.matmul %28, %30, %cst_15 {dimension_numbers = #tpu.dot_dimension_numbers<[1], [0], [0], [1], [0, 0, 1, 1], [], []>} : vector<6x128xbf16>, vector<128x128xbf16>, vector<6x128xf32> -> vector<6x128xf32>
    %32 = arith.addf %26, %31 : vector<6x128xf32>
    %c0_16 = arith.constant 0 : index
    %c3 = arith.constant 3 : index
    %c0_17 = arith.constant 0 : index
    %33 = vector.load %arg1[%c0_16, %c3, %c0_17] : memref<2x16x128xbf16, #tpu.memory_space<vmem>>, vector<1x6x128xbf16>
    %34 = vector.shape_cast %33 : vector<1x6x128xbf16> to vector<6x128xbf16>
    %c2 = arith.constant 2 : index
    %c0_18 = arith.constant 0 : index
    %c0_19 = arith.constant 0 : index
    %35 = vector.load %arg2[%c2, %c0_18, %c0_19] : memref<4x128x128xbf16, #tpu.memory_space<vmem>>, vector<1x128x128xbf16>
    %36 = vector.shape_cast %35 : vector<1x128x128xbf16> to vector<128x128xbf16>
    %cst_20 = arith.constant dense<0.000000e+00> : vector<6x128xf32>
    %37 = tpu.matmul %34, %36, %cst_20 {dimension_numbers = #tpu.dot_dimension_numbers<[1], [0], [0], [1], [0, 0, 1, 1], [], []>} : vector<6x128xbf16>, vector<128x128xbf16>, vector<6x128xf32> -> vector<6x128xf32>
    %38 = arith.addf %32, %37 : vector<6x128xf32>
    %c0_21 = arith.constant 0 : index
    %c4 = arith.constant 4 : index
    %c0_22 = arith.constant 0 : index
    %39 = vector.load %arg1[%c0_21, %c4, %c0_22] : memref<2x16x128xbf16, #tpu.memory_space<vmem>>, vector<1x6x128xbf16>
    %40 = vector.shape_cast %39 : vector<1x6x128xbf16> to vector<6x128xbf16>
    %c3_23 = arith.constant 3 : index
    %c0_24 = arith.constant 0 : index
    %c0_25 = arith.constant 0 : index
    %41 = vector.load %arg2[%c3_23, %c0_24, %c0_25] : memref<4x128x128xbf16, #tpu.memory_space<vmem>>, vector<1x128x128xbf16>
    %42 = vector.shape_cast %41 : vector<1x128x128xbf16> to vector<128x128xbf16>
    %cst_26 = arith.constant dense<0.000000e+00> : vector<6x128xf32>
    %43 = tpu.matmul %40, %42, %cst_26 {dimension_numbers = #tpu.dot_dimension_numbers<[1], [0], [0], [1], [0, 0, 1, 1], [], []>} : vector<6x128xbf16>, vector<128x128xbf16>, vector<6x128xf32> -> vector<6x128xf32>
    %44 = arith.addf %38, %43 : vector<6x128xf32>
    %cst_27 = arith.constant 0.000000e+00 : f32
    %45 = vector.broadcast %cst_27 : f32 to vector<6x128xf32>
    %46 = arith.select %18, %44, %45 : vector<6x128xi1>, vector<6x128xf32>
    %cst_28 = arith.constant dense<0.000000e+00> : vector<128xf32>
    %47 = vector.multi_reduction <add>, %46, %cst_28 [0] : vector<6x128xf32> to vector<128xf32>
    %48 = vector.shape_cast %47 : vector<128xf32> to vector<1x128xf32>
    %49 = arith.addf %19, %48 : vector<1x128xf32>
    %cst_29 = arith.constant 0.000000e+00 : f32
    %50 = vector.broadcast %cst_29 : f32 to vector<6x128xf32>
    %c1_30 = arith.constant 1 : index
    %c0_31 = arith.constant 0 : index
    %c0_32 = arith.constant 0 : index
    %51 = vector.load %arg1[%c1_30, %c0_31, %c0_32] : memref<2x16x128xbf16, #tpu.memory_space<vmem>>, vector<1x6x128xbf16>
    %52 = vector.shape_cast %51 : vector<1x6x128xbf16> to vector<6x128xbf16>
    %c0_33 = arith.constant 0 : index
    %c0_34 = arith.constant 0 : index
    %c0_35 = arith.constant 0 : index
    %53 = vector.load %arg2[%c0_33, %c0_34, %c0_35] : memref<4x128x128xbf16, #tpu.memory_space<vmem>>, vector<1x128x128xbf16>
    %54 = vector.shape_cast %53 : vector<1x128x128xbf16> to vector<128x128xbf16>
    %cst_36 = arith.constant dense<0.000000e+00> : vector<6x128xf32>
    %55 = tpu.matmul %52, %54, %cst_36 {dimension_numbers = #tpu.dot_dimension_numbers<[1], [0], [0], [1], [0, 0, 1, 1], [], []>} : vector<6x128xbf16>, vector<128x128xbf16>, vector<6x128xf32> -> vector<6x128xf32>
    %56 = arith.addf %50, %55 : vector<6x128xf32>
    %c1_37 = arith.constant 1 : index
    %c1_38 = arith.constant 1 : index
    %c0_39 = arith.constant 0 : index
    %57 = vector.load %arg1[%c1_37, %c1_38, %c0_39] : memref<2x16x128xbf16, #tpu.memory_space<vmem>>, vector<1x6x128xbf16>
    %58 = vector.shape_cast %57 : vector<1x6x128xbf16> to vector<6x128xbf16>
    %c1_40 = arith.constant 1 : index
    %c0_41 = arith.constant 0 : index
    %c0_42 = arith.constant 0 : index
    %59 = vector.load %arg2[%c1_40, %c0_41, %c0_42] : memref<4x128x128xbf16, #tpu.memory_space<vmem>>, vector<1x128x128xbf16>
    %60 = vector.shape_cast %59 : vector<1x128x128xbf16> to vector<128x128xbf16>
    %cst_43 = arith.constant dense<0.000000e+00> : vector<6x128xf32>
    %61 = tpu.matmul %58, %60, %cst_43 {dimension_numbers = #tpu.dot_dimension_numbers<[1], [0], [0], [1], [0, 0, 1, 1], [], []>} : vector<6x128xbf16>, vector<128x128xbf16>, vector<6x128xf32> -> vector<6x128xf32>
    %62 = arith.addf %56, %61 : vector<6x128xf32>
    %c1_44 = arith.constant 1 : index
    %c3_45 = arith.constant 3 : index
    %c0_46 = arith.constant 0 : index
    %63 = vector.load %arg1[%c1_44, %c3_45, %c0_46] : memref<2x16x128xbf16, #tpu.memory_space<vmem>>, vector<1x6x128xbf16>
    %64 = vector.shape_cast %63 : vector<1x6x128xbf16> to vector<6x128xbf16>
    %c2_47 = arith.constant 2 : index
    %c0_48 = arith.constant 0 : index
    %c0_49 = arith.constant 0 : index
    %65 = vector.load %arg2[%c2_47, %c0_48, %c0_49] : memref<4x128x128xbf16, #tpu.memory_space<vmem>>, vector<1x128x128xbf16>
    %66 = vector.shape_cast %65 : vector<1x128x128xbf16> to vector<128x128xbf16>
    %cst_50 = arith.constant dense<0.000000e+00> : vector<6x128xf32>
    %67 = tpu.matmul %64, %66, %cst_50 {dimension_numbers = #tpu.dot_dimension_numbers<[1], [0], [0], [1], [0, 0, 1, 1], [], []>} : vector<6x128xbf16>, vector<128x128xbf16>, vector<6x128xf32> -> vector<6x128xf32>
    %68 = arith.addf %62, %67 : vector<6x128xf32>
    %c1_51 = arith.constant 1 : index
    %c4_52 = arith.constant 4 : index
    %c0_53 = arith.constant 0 : index
    %69 = vector.load %arg1[%c1_51, %c4_52, %c0_53] : memref<2x16x128xbf16, #tpu.memory_space<vmem>>, vector<1x6x128xbf16>
    %70 = vector.shape_cast %69 : vector<1x6x128xbf16> to vector<6x128xbf16>
    %c3_54 = arith.constant 3 : index
    %c0_55 = arith.constant 0 : index
    %c0_56 = arith.constant 0 : index
    %71 = vector.load %arg2[%c3_54, %c0_55, %c0_56] : memref<4x128x128xbf16, #tpu.memory_space<vmem>>, vector<1x128x128xbf16>
    %72 = vector.shape_cast %71 : vector<1x128x128xbf16> to vector<128x128xbf16>
    %cst_57 = arith.constant dense<0.000000e+00> : vector<6x128xf32>
    %73 = tpu.matmul %70, %72, %cst_57 {dimension_numbers = #tpu.dot_dimension_numbers<[1], [0], [0], [1], [0, 0, 1, 1], [], []>} : vector<6x128xbf16>, vector<128x128xbf16>, vector<6x128xf32> -> vector<6x128xf32>
    %74 = arith.addf %68, %73 : vector<6x128xf32>
    %cst_58 = arith.constant 0.000000e+00 : f32
    %75 = vector.broadcast %cst_58 : f32 to vector<6x128xf32>
    %76 = arith.select %18, %74, %75 : vector<6x128xi1>, vector<6x128xf32>
    %cst_59 = arith.constant dense<0.000000e+00> : vector<128xf32>
    %77 = vector.multi_reduction <add>, %76, %cst_59 [0] : vector<6x128xf32> to vector<128xf32>
    %78 = vector.shape_cast %77 : vector<128xf32> to vector<1x128xf32>
    %79 = arith.addf %49, %78 : vector<1x128xf32>
    %cst_60 = arith.constant 8.000000e+00 : f32
    %80 = vector.broadcast %cst_60 : f32 to vector<1x128xf32>
    %81 = arith.divf %79, %80 : vector<1x128xf32>
    %cst_61 = arith.constant 0.000000e+00 : f32
    %82 = vector.broadcast %cst_61 : f32 to vector<1x128xf32>
    %83 = vector.broadcast %81 : vector<1x128xf32> to vector<6x128xf32>
    %84 = arith.subf %44, %83 : vector<6x128xf32>
    %cst_62 = arith.constant 0.000000e+00 : f32
    %85 = vector.broadcast %cst_62 : f32 to vector<6x128xf32>
    %86 = arith.select %18, %84, %85 : vector<6x128xi1>, vector<6x128xf32>
    %87 = arith.mulf %86, %86 : vector<6x128xf32>
    %cst_63 = arith.constant dense<0.000000e+00> : vector<128xf32>
    %88 = vector.multi_reduction <add>, %87, %cst_63 [0] : vector<6x128xf32> to vector<128xf32>
    %89 = vector.shape_cast %88 : vector<128xf32> to vector<1x128xf32>
    %90 = arith.addf %82, %89 : vector<1x128xf32>
    %91 = vector.broadcast %81 : vector<1x128xf32> to vector<6x128xf32>
    %92 = arith.subf %74, %91 : vector<6x128xf32>
    %cst_64 = arith.constant 0.000000e+00 : f32
    %93 = vector.broadcast %cst_64 : f32 to vector<6x128xf32>
    %94 = arith.select %18, %92, %93 : vector<6x128xi1>, vector<6x128xf32>
    %95 = arith.mulf %94, %94 : vector<6x128xf32>
    %cst_65 = arith.constant dense<0.000000e+00> : vector<128xf32>
    %96 = vector.multi_reduction <add>, %95, %cst_65 [0] : vector<6x128xf32> to vector<128xf32>
    %97 = vector.shape_cast %96 : vector<128xf32> to vector<1x128xf32>
    %98 = arith.addf %90, %97 : vector<1x128xf32>
    %cst_66 = arith.constant 8.000000e+00 : f32
    %99 = vector.broadcast %cst_66 : f32 to vector<1x128xf32>
    %100 = arith.divf %98, %99 : vector<1x128xf32>
    %c0_67 = arith.constant 0 : index
    %c0_68 = arith.constant 0 : index
    %101 = vector.load %arg3[%c0_67, %c0_68] : memref<1x128xf32, #tpu.memory_space<vmem>>, vector<1x128xf32>
    %cst_69 = arith.constant 9.99999974E-6 : f32
    %102 = vector.broadcast %cst_69 : f32 to vector<1x128xf32>
    %103 = arith.addf %100, %102 : vector<1x128xf32>
    %104 = math.rsqrt %103 : vector<1x128xf32>
    %105 = arith.mulf %101, %104 : vector<1x128xf32>
    %c0_70 = arith.constant 0 : index
    %c0_71 = arith.constant 0 : index
    %106 = vector.load %arg4[%c0_70, %c0_71] : memref<1x128xf32, #tpu.memory_space<vmem>>, vector<1x128xf32>
    %107 = arith.mulf %81, %105 : vector<1x128xf32>
    %108 = arith.subf %106, %107 : vector<1x128xf32>
    %109 = vector.broadcast %105 : vector<1x128xf32> to vector<6x128xf32>
    %110 = arith.mulf %44, %109 : vector<6x128xf32>
    %111 = vector.broadcast %108 : vector<1x128xf32> to vector<6x128xf32>
    %112 = arith.addf %110, %111 : vector<6x128xf32>
    %cst_72 = arith.constant 2.000000e-01 : f32
    %113 = vector.broadcast %cst_72 : f32 to vector<6x128xf32>
    %114 = arith.mulf %113, %112 : vector<6x128xf32>
    %115 = arith.maximumf %112, %114 : vector<6x128xf32>
    %116 = arith.truncf %115 : vector<6x128xf32> to vector<6x128xbf16>
    %c0_73 = arith.constant 0 : index
    %c0_74 = arith.constant 0 : index
    %c0_75 = arith.constant 0 : index
    %117 = vector.load %arg5[%c0_73, %c0_74, %c0_75] : memref<2x6x128xbf16, #tpu.memory_space<vmem>>, vector<1x6x128xbf16>
    %118 = vector.shape_cast %117 : vector<1x6x128xbf16> to vector<6x128xbf16>
    %119 = vector.shape_cast %116 : vector<6x128xbf16> to vector<1x6x128xbf16>
    tpu.vector_store %arg5[%c0_73, %c0_74, %c0_75], %119 {strides = array<i32>} : memref<2x6x128xbf16, #tpu.memory_space<vmem>>, vector<1x6x128xbf16>,
    %120 = vector.broadcast %105 : vector<1x128xf32> to vector<6x128xf32>
    %121 = arith.mulf %74, %120 : vector<6x128xf32>
    %122 = vector.broadcast %108 : vector<1x128xf32> to vector<6x128xf32>
    %123 = arith.addf %121, %122 : vector<6x128xf32>
    %cst_76 = arith.constant 2.000000e-01 : f32
    %124 = vector.broadcast %cst_76 : f32 to vector<6x128xf32>
    %125 = arith.mulf %124, %123 : vector<6x128xf32>
    %126 = arith.maximumf %123, %125 : vector<6x128xf32>
    %127 = arith.truncf %126 : vector<6x128xf32> to vector<6x128xbf16>
    %c1_77 = arith.constant 1 : index
    %c0_78 = arith.constant 0 : index
    %c0_79 = arith.constant 0 : index
    %128 = vector.load %arg5[%c1_77, %c0_78, %c0_79] : memref<2x6x128xbf16, #tpu.memory_space<vmem>>, vector<1x6x128xbf16>
    %129 = vector.shape_cast %128 : vector<1x6x128xbf16> to vector<6x128xbf16>
    %130 = vector.shape_cast %127 : vector<6x128xbf16> to vector<1x6x128xbf16>
    tpu.vector_store %arg5[%c1_77, %c0_78, %c0_79], %130 {strides = array<i32>} : memref<2x6x128xbf16, #tpu.memory_space<vmem>>, vector<1x6x128xbf16>,
    return
  }
  func.func @transform_0(%arg0: i32) -> (i32, i32, i32) {
    %c0_i32 = arith.constant 0 : i32
    %c0_i32_0 = arith.constant 0 : i32
    %c0_i32_1 = arith.constant 0 : i32
    %c0_i32_2 = arith.constant 0 : i32
    return %c0_i32, %c0_i32_0, %c0_i32_1 : i32, i32, i32
  }
  func.func @transform_1(%arg0: i32) -> (i32, i32, i32) {
    %c0_i32 = arith.constant 0 : i32
    %c0_i32_0 = arith.constant 0 : i32
    %c0_i32_1 = arith.constant 0 : i32
    %c0_i32_2 = arith.constant 0 : i32
    return %c0_i32, %c0_i32_0, %c0_i32_1 : i32, i32, i32
  }
  func.func @transform_2(%arg0: i32) -> (i32, i32) {
    %c0_i32 = arith.constant 0 : i32
    %c0_i32_0 = arith.constant 0 : i32
    %c0_i32_1 = arith.constant 0 : i32
    return %c0_i32, %c0_i32_0 : i32, i32
  }
  func.func @transform_3(%arg0: i32) -> (i32, i32) {
    %c0_i32 = arith.constant 0 : i32
    %c0_i32_0 = arith.constant 0 : i32
    %c0_i32_1 = arith.constant 0 : i32
    return %c0_i32, %c0_i32_0 : i32, i32
  }
  func.func @transform_4(%arg0: i32) -> (i32, i32, i32) {
    %c0_i32 = arith.constant 0 : i32
    %c0_i32_0 = arith.constant 0 : i32
    %c0_i32_1 = arith.constant 0 : i32
    %c0_i32_2 = arith.constant 0 : i32
    return %c0_i32, %c0_i32_0, %c0_i32_1 : i32, i32, i32
  }
}

</mosaic_0001>

<bundles_post_ra>
// kernel: _lambda_.3
= control target key start
LH: loop header
LB: loop body
LE: loop exit
PB: predicated region body
PF: predicated region fallthrough
CT: control target
= control target key end

     0   :  { %s1257_s9 = smov 0   ;;  %s1468_s0 = inlined_call_operand.vmem [shape: bf16[2,88,44], index: 0, kind: input, shape index: {}]   ;;  %s1469_s1 = inlined_call_operand.vmem [shape: bf16[4,44,128], index: 1, kind: input, shape index: {}]   ;;  %s1470_s2 = inlined_call_operand.vmem [shape: bf16[2,72,128], index: 2, kind: output, shape index: {}]  }
   0x1 LB: > { %s899_s10 = sadd.s32 4294967295, %s1238_s9   ;;  %p903_p0 = scmp.ge.s32.totalorder %s1238_s9, 1  ;;  %s1238_s9 = sphi %s1257_s9, %s12_s9  }
   0x2   : > { %p112_p1 = scmp.lt.s32.totalorder %s1238_s9, 3 }
   0x4   : > { %p113_p2 = pnand %p903_p0, %p112_p1 }
   0x5   : > { %v1208_v0 = vld [vmem:[%s1469_s1 + $0x18] sm:$0xff] (!%p113_p2)   ;;  %v1240_v1 = vmov (!%p113_p2), 0.0   ;;  %v1209_v2 = vld [vmem:[%s1469_s1 + $0x30] sm:$0xff] (!%p113_p2)   ;;  %vm266_vm0 = vcmask (!%p113_p2), 1045504   ;;  %v1210_v3 = vld [vmem:[%s1469_s1 + $0x20] sm:$0xff] (!%p113_p2)   ;;  %p134_p3 = scmp.lt.s32.totalorder (!%p113_p2), %s899_s10, 1 }
   0x6   : > { %116 = sbr.rel (%p113_p2) target bundleno = 321 (0x141), region = 28  ;;  %1043 = vmatprep.subr.bf16.mxu1 (!%p113_p2), %v1240_v1  ;;  %1095 = vmatprep.subr.bf16.mxu0 (!%p113_p2), %v1240_v1  ;;  %v1211_v4 = vld [vmem:[%s1469_s1 + $0x38] sm:$0xff] (!%p113_p2)   ;;  %v1212_v5 = vld [vmem:[%s1469_s1 + $0x28] sm:$0x3f] (!%p113_p2)   ;;  %vm1241_vm1 = vmmov (!%p113_p2), 0   ;;  %vm250_vm3 = vcmask (!%p113_p2), 359424  }
   0x7   : > { %1044 = vmatpush3.bf16.msra.mxu1 (!%p113_p2), %v1208_v0  ;;  %1096 = vmatpush3.bf16.msra.mxu0 (!%p113_p2), %v1209_v2  ;;  %v1213_v6 = vld [vmem:[%s1469_s1 + $0x40] sm:$0x3f] (!%p113_p2)   ;;  %v268_v7 = vsel (!%p113_p2), %vm266_vm0, %v1212_v5, 0  ;;  %vm193_vm2 = vsmask.f32 (!%p113_p2), 7424  ;;  %v1219_v33 = vld [vmem:[%s1469_s1 + $0x48] sm:$0xff] (!%p113_p2)  }
   0x8   : > { %1045 = vmatprep.subr.bf16.mxu1 (!%p113_p2), %v1240_v1  ;;  %1097 = vmatprep.subr.bf16.mxu0 (!%p113_p2), %v1240_v1  ;;  %v560_v8 = vsel (!%p113_p2), %vm266_vm0, %v1213_v6, 0  ;;  %v1216_v23 = vld [vmem:[%s1469_s1] sm:$0xff] (!%p113_p2)   ;;  %v1222_v36 = vld [vmem:[%s1469_s1 + $0x8] sm:$0xff] (!%p113_p2)   ;;  %v1223_v41 = vld [vmem:[%s1469_s1 + $0x50] sm:$0xff] (!%p113_p2)   ;;  %vm654_vm4 = vcmask (!%p113_p2), 1046528  }
   0x9   : > { %1049 = vmatprep.mubr.msk.bf16.mxu1 (!%p113_p2), %vm1241_vm1, %v1240_v1  ;;  %1101 = vmatprep.mubr.msk.bf16.mxu0 (!%p113_p2), %vm1241_vm1, %v1240_v1  ;;  %v1228_v45 = vld [vmem:[%s1469_s1 + $0x10] sm:$0x3f] (!%p113_p2)   ;;  %v1229_v46 = vld [vmem:[%s1469_s1 + $0x58] sm:$0x3f] (!%p113_p2)  }
   0xa   : > { %v372_v52 = vsel (!%p113_p2), %vm266_vm0, %v1228_v45, 0  ;;  %v697_v56 = vsel (!%p113_p2), %vm266_vm0, %v1229_v46, 0 }
   0xb   : > { %1046 = vmatpush3.bf16.msra.mxu1 (!%p113_p2), %v1210_v3  ;;  %1098 = vmatpush3.bf16.msra.mxu0 (!%p113_p2), %v1211_v4 }
   0xc   : > { %1047 = vmatprep.subr.bf16.mxu1 (!%p113_p2), %v1240_v1  ;;  %1099 = vmatprep.subr.bf16.mxu0 (!%p113_p2), %v1240_v1 }
   0xd   : > { %s1472_s10 = smov (!%p134_p3, %s899_s10), 1 }
   0xe   : > { %s1196_s23 = smul.u32 44, %s1472_s10 }
   0xf   : > { %1048 = vmatpush3.bf16.msra.mxu1 %v268_v7  ;;  %1100 = vmatpush3.bf16.msra.mxu0 %v560_v8  ;;  %s1197_s13 = smul.u32 36, %s1472_s10 }
  0x10   : > { %s1301_s26 = scalar_lea.vmem %s1468_s0, %s1196_s23  ;;  %1069 = vmatprep.subr.bf16.mxu1 %v1240_v1  ;;  %1121 = vmatprep.subr.bf16.mxu0 %v1240_v1 }
  0x11   : > { %v1306_v9 = vld [vmem:[%s1301_s26] sm:$0xff]   ;;  %v1309_v10 = vld [vmem:[%s1301_s26 + $0x8] sm:$0xff]   ;;  %v1323_v18 = vld [vmem:[%s1301_s26 + $0x10] sm:$0xff]   ;;  %s1458_s16 = scalar_lea.vmem %s1470_s2, %s1197_s13 }
  0x12   : > { %v446_v11 = vld [vmem:[%s1301_s26 + $0x4] sm:$0xf]  ;;  %v1313_v12 = vld [vmem:[%s1301_s26 + $0x8] sm:$0xf]  ;;  %v195_v13 = vshrl.u32 %v1306_v9, 16  ;;  %v197_v14 = vshll.u32 %v1306_v9, 16 }
  0x13   : > { %v202_v15 = vshll.u32 %v1309_v10, 16  ;;  %v940_v16 = vcombine.low %v446_v11, %v1313_v12  ;;  %v1320_v17 = vld [vmem:[%s1301_s26 + $0xc] sm:$0xff]   ;;  %v206_v25 = vshrl.u32 %v1309_v10, 16  ;;  %v1331_v26 = vld [vmem:[%s1301_s26 + $0x14] sm:$0xff]   ;;  %v210_v29 = vshll.u32 %v1323_v18, 16  ;;  %v1358_v44 = vld [vmem:[%s1301_s26 + $0x1c] sm:$0xff]  }
  0x14   : > { %v199_v19 = vrot.slane %v197_v14, 1  ;;  %v496_v24 = vshll.u32 %v1320_v17, 16  ;;  %v500_v34 = vshrl.u32 %v1320_v17, 16  ;;  %v504_v35 = vshll.u32 %v1331_v26, 16  ;;  %v1348_v40 = vld [vmem:[%s1301_s26 + $0x18] sm:$0xff]  }
  0x15   : > { %v204_v20 = vrot.slane %v202_v15, 1  ;;  %v489_v21 = vshrl.u32 %v940_v16, 16  ;;  %v491_v22 = vshll.u32 %v940_v16, 16  ;;  %v212_v39 = vrot.slane %v210_v29, 1  ;;  %v1371_v50 = vld [vmem:[%s1301_s26 + $0x20] sm:$0xf] }
  0x16   : > { %v200_v27 = vor.u32 %v199_v19, %v195_v13  ;;  %v498_v30 = vrot.slane %v496_v24, 1  ;;  %v506_v43 = vrot.slane %v504_v35, 1  ;;  %v214_v48 = vshrl.u32 %v1323_v18, 16  ;;  %v160_v51 = vld [vmem:[%s1301_s26 + $0x24] sm:$0x1] }
  0x17   : > { %v493_v28 = vrot.slane %v491_v22, 1  ;;  %v208_v38 = vor.u32 %v206_v25, %v204_v20  ;;  %v218_v49 = vshll.u32 %v1348_v40, 16  ;;  %v508_v54 = vshrl.u32 %v1331_v26, 16  ;;  %v1227_v62 = vld [vmem:[%s1301_s26 + $0x24] sm:$0x1f]  }
  0x18   : > { %v205_v31 = vsel %vm193_vm2, %v200_v27, %v204_v20  ;;  %v502_v42 = vor.u32 %v500_v34, %v498_v30  ;;  %v512_v55 = vshll.u32 %v1358_v44, 16  ;;  %v216_v57 = vor.u32 %v214_v48, %v212_v39  ;;  %v643_v20 = vld [vmem:[%s1301_s26 + $0x4] sm:$0xe] }
  0x19   : > { %v494_v32 = vor.u32 %v493_v28, %v489_v21  ;;  %1050 = vmatmul.mubr.msk.bf16.vlgmr.msra.gmra.mrb[0].mxu1 %vm250_vm3, %v205_v31  ;;  %v213_v47 = vsel %vm193_vm2, %v208_v38, %v212_v39  ;;  %v220_v58 = vrot.slane %v218_v49, 1  ;;  %v916_v59 = vcombine.low %v1371_v50, %v160_v51 }
  0x1a   : > { %1070 = vmatpush3.bf16.msra.mxu1 %v1216_v23  ;;  %1053 = vmatprep.mubr.msk.bf16.mxu1 %vm1241_vm1, %v1240_v1  ;;  %v507_v53 = vsel %vm193_vm2, %v502_v42, %v506_v43  ;;  %v510_v60 = vor.u32 %v508_v54, %v506_v43  ;;  %v514_v61 = vrot.slane %v512_v55, 1  ;;  %v222_v0 = vshrl.u32 %v1348_v40, 16 }
  0x1b   : > { %v499_v37 = vsel %vm193_vm2, %v494_v32, %v498_v30  ;;  %1071 = vmatprep.subr.bf16.mxu1 %v1240_v1  ;;  %v221_v63 = vsel %vm193_vm2, %v216_v57, %v220_v58  ;;  %v226_v2 = vshll.u32 %v916_v59, 16  ;;  %v516_v4 = vshrl.u32 %v1358_v44, 16 }
  0x1c   : > { %1102 = vmatmul.mubr.msk.bf16.vlgmr.msra.gmra.mrb[0].mxu0 %vm250_vm3, %v499_v37  ;;  %v515_v3 = vsel %vm193_vm2, %v510_v60, %v514_v61  ;;  %v520_v5 = vshll.u32 %v1227_v62, 16  ;;  %v224_v6 = vor.u32 %v222_v0, %v220_v58  ;;  %v230_v15 = vshrl.u32 %v916_v59, 16 }
  0x1d   : > { %1122 = vmatpush3.bf16.msra.mxu0 %v1219_v33  ;;  %1105 = vmatprep.mubr.msk.bf16.mxu0 %vm1241_vm1, %v1240_v1  ;;  %v228_v7 = vrot.slane %v226_v2, 1  ;;  %v518_v8 = vor.u32 %v516_v4, %v514_v61  ;;  %v524_v16 = vshrl.u32 %v1227_v62, 16  ;;  %v959_v22 = vcombine.low %v643_v20, %v1313_v12 }
  0x1e   : > { %1123 = vmatprep.subr.bf16.mxu0 %v1240_v1  ;;  %1072 = vmatpush3.bf16.msra.mxu1 %v1222_v36  ;;  %v522_v11 = vrot.slane %v520_v5, 1  ;;  %v656_v24 = vrot.slane %v1320_v17, 1  ;;  %v658_v12 = vrot.slane %v1331_v26, 1 }
  0x1f   : > { %1073 = vmatprep.subr.bf16.mxu1 %v1240_v1  ;;  %v229_v13 = vsel %vm193_vm2, %v224_v6, %v228_v7  ;;  %v232_v19 = vor.u32 %v230_v15, %v228_v7  ;;  %v655_v23 = vrot.slane %v959_v22, 1 }
  0x20   : > { %v523_v14 = vsel %vm193_vm2, %v518_v8, %v522_v11  ;;  %v526_v21 = vor.u32 %v524_v16, %v522_v11  ;;  %v659_v27 = vsel %vm654_vm4, %v656_v24, %v658_v12 }
  0x21   : > { %1124 = vmatpush3.bf16.msra.mxu0 %v1223_v41  ;;  %1054 = vmatmul.mubr.msk.bf16.gmra.mrb[4].mxu1 %vm250_vm3, %v213_v47  ;;  %v657_v25 = vsel %vm654_vm4, %v655_v23, %v656_v24 }
  0x22   : > { %1125 = vmatprep.subr.bf16.mxu0 %v1240_v1  ;;  %1057 = vmatprep.mubr.msk.bf16.mxu1 %vm1241_vm1, %v1240_v1 }
  0x23   : > { %1074 = vmatpush3.bf16.msra.mxu1 %v372_v52 }
  0x24   : > { %1106 = vmatmul.mubr.msk.bf16.gmra.mrb[4].mxu0 %vm250_vm3, %v507_v53 }
  0x25   : > { %1109 = vmatprep.mubr.msk.bf16.mxu0 %vm1241_vm1, %v1240_v1  ;;  %1126 = vmatpush3.bf16.msra.mxu0 %v697_v56 }
  0x29   : > { %1058 = vmatmul.mubr.msk.bf16.gmra.mrb[8].mxu1 %vm250_vm3, %v221_v63 }
  0x2a   : > { %1061 = vmatprep.mubr.msk.bf16.mxu1 %vm1241_vm1, %v1240_v1 }
  0x2c   : > { %1110 = vmatmul.mubr.msk.bf16.gmra.mrb[8].mxu0 %vm250_vm3, %v515_v3 }
  0x2d   : > { %1113 = vmatprep.mubr.msk.bf16.mxu0 %vm1241_vm1, %v1240_v1 }
  0x31   : > { %1062 = vmatmul.mubr.msk.bf16.gmra.mrb[12].mxu1 %vm250_vm3, %v229_v13 }
  0x32   : > { %1065 = vmatprep.mubr.msk.bf16.mxu1 %vm1241_vm1, %v1240_v1 }
  0x34   : > { %1114 = vmatmul.mubr.msk.bf16.gmra.mrb[12].mxu0 %vm250_vm3, %v523_v14 }
  0x35   : > { %1117 = vmatprep.mubr.msk.bf16.mxu0 %vm1241_vm1, %v1240_v1 }
  0x39   : > { %1066 = vmatmul.mubr.msk.bf16.gmra.mrb[16].mxu1 %vm250_vm3, %v232_v19 }
  0x3a   : > { %1075 = vmatprep.mubr.msk.bf16.mxu1 %vm1241_vm1, %v1240_v1 }
  0x3c   : > { %1118 = vmatmul.mubr.msk.bf16.gmra.mrb[16].mxu0 %vm250_vm3, %v526_v21 }
  0x3d   : > { %1127 = vmatprep.mubr.msk.bf16.mxu0 %vm1241_vm1, %v1240_v1 }
  0x41   : > { %1076 = vmatmul.mubr.msk.bf16.vlgmr.msra.gmra.mrb[0].mxu1 %vm250_vm3, %v1306_v9  ;;  %v660_v9 = vrot.slane %v1358_v44, 1 }
  0x42   : > { %1079 = vmatprep.mubr.msk.bf16.mxu1 %vm1241_vm1, %v1240_v1 }
  0x43   : > { %v661_v17 = vsel %vm654_vm4, %v658_v12, %v660_v9 }
  0x44   : > { %1128 = vmatmul.mubr.msk.bf16.vlgmr.msra.gmra.mrb[0].mxu0 %vm250_vm3, %v657_v25 }
  0x45   : > { %1131 = vmatprep.mubr.msk.bf16.mxu0 %vm1241_vm1, %v1240_v1 }
  0x49   : > { %1080 = vmatmul.mubr.msk.bf16.gmra.mrb[4].mxu1 %vm250_vm3, %v1309_v10  ;;  %v662_v10 = vrot.slane %v1227_v62, 1 }
  0x4a   : > { %1083 = vmatprep.mubr.msk.bf16.mxu1 %vm1241_vm1, %v1240_v1 }
  0x4b   : > { %v663_v26 = vsel %vm654_vm4, %v660_v9, %v662_v10 }
  0x4c   : > { %1132 = vmatmul.mubr.msk.bf16.gmra.mrb[4].mxu0 %vm250_vm3, %v659_v27 }
  0x4d   : > { %1135 = vmatprep.mubr.msk.bf16.mxu0 %vm1241_vm1, %v1240_v1 }
  0x51   : > { %1084 = vmatmul.mubr.msk.bf16.gmra.mrb[8].mxu1 %vm250_vm3, %v1323_v18  ;;  %v925_v18 = vcombine.low %v1371_v50, %v1371_v50 }
  0x52   : > { %1087 = vmatprep.mubr.msk.bf16.mxu1 %vm1241_vm1, %v1240_v1 }
  0x54   : > { %1136 = vmatmul.mubr.msk.bf16.gmra.mrb[8].mxu0 %vm250_vm3, %v661_v17 }
  0x55   : > { %1139 = vmatprep.mubr.msk.bf16.mxu0 %vm1241_vm1, %v1240_v1 }
  0x59   : > { %1088 = vmatmul.mubr.msk.bf16.gmra.mrb[12].mxu1 %vm250_vm3, %v1348_v40 }
  0x5a   : > { %1091 = vmatprep.mubr.msk.bf16.mxu1 %vm1241_vm1, %v1240_v1 }
  0x5c   : > { %1140 = vmatmul.mubr.msk.bf16.gmra.mrb[12].mxu0 %vm250_vm3, %v663_v26 }
  0x5d   : > { %1143 = vmatprep.mubr.msk.bf16.mxu0 %vm1241_vm1, %v1240_v1 }
  0x61   : > { %1092 = vmatmul.mubr.msk.bf16.gmra.mrb[16].mxu1 %vm250_vm3, %v925_v18 }
  0x64   : > { %1144 = vmatmul.mubr.msk.bf16.gmra.mrb[16].mxu0 %vm250_vm3, %v662_v10 }
 0x114   : > { %v408_v28 = vpop.f32.mrb[0].mxu1 }
 0x115   : > { %v1077_v29 = vpop.f32.mrb[1].mxu1 }
 0x116   : > { %v411_v31 = vpop.f32.mrb[2].mxu1 }
 0x117   : > { %v733_v30 = vpop.f32.mrb[0].mxu0  ;;  %v1078_v34 = vpop.f32.mrb[3].mxu1 }
 0x118   : > { %v1147_v32 = vadd.f32 %v733_v30, %v408_v28  ;;  %v1129_v33 = vpop.f32.mrb[1].mxu0 }
 0x119   : > { %v736_v35 = vpop.f32.mrb[2].mxu0 }
 0x11a   : > { %v780_v36 = vmul.f32 0.2, %v1147_v32  ;;  %v1148_v37 = vadd.f32 %v736_v35, %v411_v31  ;;  %v1130_v38 = vpop.f32.mrb[3].mxu0 }
 0x11c   : > { %v781_v1 = vmul.f32 0.2, %v1148_v37  ;;  %v416_v39 = vpop.f32.mrb[4].mxu1  ;;  %v789_v40 = vmax.f32 %v1147_v32, %v780_v36 }
 0x11d   : > { %v1081_v42 = vpop.f32.mrb[5].mxu1 }
 0x11e   : > { %v790_v41 = vmax.f32 %v1148_v37, %v781_v1  ;;  %v419_v44 = vpop.f32.mrb[6].mxu1 }
 0x11f   : > { %v741_v43 = vpop.f32.mrb[4].mxu0  ;;  %v1082_v48 = vpop.f32.mrb[7].mxu1 }
 0x120   : > { %v991_v45 = vpack.c.bf16 %v790_v41, %v789_v40  ;;  %v1149_v46 = vadd.f32 %v741_v43, %v416_v39  ;;  %v1133_v47 = vpop.f32.mrb[5].mxu0 }
 0x121   : > { %v744_v49 = vpop.f32.mrb[6].mxu0 }
 0x122   : > { %992 = vst [vmem:[%s1458_s16] sm:$0xff] %v991_v45   ;;  %v782_v50 = vmul.f32 0.2, %v1149_v46  ;;  %v1150_v51 = vadd.f32 %v744_v49, %v419_v44  ;;  %v1134_v52 = vpop.f32.mrb[7].mxu0 }
 0x124   : > { %v783_v53 = vmul.f32 0.2, %v1150_v51  ;;  %v424_v54 = vpop.f32.mrb[8].mxu1  ;;  %v791_v55 = vmax.f32 %v1149_v46, %v782_v50 }
 0x125   : > { %v1085_v57 = vpop.f32.mrb[9].mxu1 }
 0x126   : > { %v792_v56 = vmax.f32 %v1150_v51, %v783_v53  ;;  %v427_v59 = vpop.f32.mrb[10].mxu1 }
 0x127   : > { %v749_v58 = vpop.f32.mrb[8].mxu0  ;;  %v1086_v63 = vpop.f32.mrb[11].mxu1 }
 0x128   : > { %v996_v60 = vpack.c.bf16 %v792_v56, %v791_v55  ;;  %v1151_v61 = vadd.f32 %v749_v58, %v424_v54  ;;  %v1137_v62 = vpop.f32.mrb[9].mxu0 }
 0x129   : > { %v752_v0 = vpop.f32.mrb[10].mxu0 }
 0x12a   : > { %1008 = vst [vmem:[%s1458_s16 + $0x8] sm:$0xff] %v996_v60   ;;  %v784_v2 = vmul.f32 0.2, %v1151_v61  ;;  %v1152_v3 = vadd.f32 %v752_v0, %v427_v59  ;;  %v1138_v4 = vpop.f32.mrb[11].mxu0 }
 0x12c   : > { %v785_v5 = vmul.f32 0.2, %v1152_v3  ;;  %v432_v6 = vpop.f32.mrb[12].mxu1  ;;  %v793_v7 = vmax.f32 %v1151_v61, %v784_v2 }
 0x12d   : > { %v1089_v11 = vpop.f32.mrb[13].mxu1 }
 0x12e   : > { %v794_v8 = vmax.f32 %v1152_v3, %v785_v5  ;;  %v435_v14 = vpop.f32.mrb[14].mxu1 }
 0x12f   : > { %v757_v13 = vpop.f32.mrb[12].mxu0  ;;  %v1090_v20 = vpop.f32.mrb[15].mxu1 }
 0x130   : > { %v1001_v15 = vpack.c.bf16 %v794_v8, %v793_v7  ;;  %v1153_v16 = vadd.f32 %v757_v13, %v432_v6  ;;  %v1141_v19 = vpop.f32.mrb[13].mxu0 }
 0x131   : > { %v760_v21 = vpop.f32.mrb[14].mxu0 }
 0x132   : > { %1009 = vst [vmem:[%s1458_s16 + $0x10] sm:$0xff] %v1001_v15   ;;  %v786_v22 = vmul.f32 0.2, %v1153_v16  ;;  %v1154_v23 = vadd.f32 %v760_v21, %v435_v14  ;;  %v1142_v24 = vpop.f32.mrb[15].mxu0 }
 0x134   : > { %v787_v25 = vmul.f32 0.2, %v1154_v23  ;;  %v440_v12 = vpop.f32.mrb[16].mxu1  ;;  %v795_v27 = vmax.f32 %v1153_v16, %v786_v22 }
 0x135   : > { %v1093_v17 = vpop.f32.mrb[17].mxu1 }
 0x136   : > { %v796_v9 = vmax.f32 %v1154_v23, %v787_v25  ;;  %v443_v26 = vpop.f32.mrb[18].mxu1 }
 0x137   : > { %v765_v10 = vpop.f32.mrb[16].mxu0  ;;  %v1094_v30 = vpop.f32.mrb[19].mxu1 }
 0x138   : > { %v1006_v18 = vpack.c.bf16 %v796_v9, %v795_v27  ;;  %v1155_v28 = vadd.f32 %v765_v10, %v440_v12  ;;  %v1145_v29 = vpop.f32.mrb[17].mxu0 }
 0x139   : > { %v768_v31 = vpop.f32.mrb[18].mxu0 }
 0x13a   : > { %1010 = vst [vmem:[%s1458_s16 + $0x18] sm:$0xff] %v1006_v18   ;;  %v788_v32 = vmul.f32 0.2, %v1155_v28  ;;  %v1146_v33 = vpop.f32.mrb[19].mxu0 }
 0x13c   : > { %v797_v34 = vmax.f32 %v1155_v28, %v788_v32 }
 0x13e   : > { %v987_v35 = vpack.c.bf16 %v797_v34, %v797_v34 }
 0x140   : > { %843 = vst [vmem:[%s1458_s16 + $0x20] sm:$0xf] %v987_v35 }
 0x141 PF: > { %s12_s9 = sadd.s32 1, %s1238_s9  }
 0x142   : > { %p9_p4 = scmp.ge.s32.totalorder %s12_s9, 4  }
 0x144   :  { %11 = sbr.rel (!%p9_p4) target bundleno = 1 (0x1), region = 61 }

// kernel: _lambda_.4
= control target key start
LH: loop header
LB: loop body
LE: loop exit
PB: predicated region body
PF: predicated region fallthrough
CT: control target
= control target key end

     0   :  { %vm102_vm0 = vsmask.f32 7424  ;;  %vm142_vm1 = vcmask 523264   ;;  %vm300_vm2 = vsmask.f32 5376  ;;  %vm412_vm3 = vcmask 1044480   ;;  %s1497_s1 = inlined_call_operand.vmem [shape: bf16[4,64,128], index: 1, kind: input, shape index: {}]   ;;  %s1498_s0 = inlined_call_operand.vmem [shape: bf16[2,32,64], index: 0, kind: input, shape index: {}]   ;;  %s1499_s2 = inlined_call_operand.vmem [shape: f32[1,128], index: 2, kind: input, shape index: {}]   ;;  %s1500_s3 = inlined_call_operand.vmem [shape: f32[1,128], index: 3, kind: input, shape index: {}]   ;;  %s1501_s4 = inlined_call_operand.vmem [shape: bf16[2,20,128], index: 4, kind: output, shape index: {}]  }
   0x1   :  { %v1206_v0 = vld [vmem:[%s1497_s1 + $0x20] sm:$0xff]   ;;  %v1207_v1 = vld [vmem:[%s1497_s1 + $0x28] sm:$0xff]   ;;  %v1208_v2 = vld [vmem:[%s1497_s1 + $0x30] sm:$0xff]  }
   0x2   :  { %1080 = vmatprep.subr.bf16.mxu0 %v1206_v0  ;;  %1128 = vmatprep.subr.bf16.mxu1 %v1206_v0  ;;  %v1210_v3 = vld [vmem:[%s1498_s0] sm:$0xff]   ;;  %v1211_v4 = vld [vmem:[%s1498_s0 + $0x8] ss:$0 sps:$4 sm:$0x77]   ;;  %v1209_v5 = vld [vmem:[%s1497_s1 + $0x38] sm:$0xff]  }
   0x3   :  { %1081 = vmatpush3.bf16.msra.mxu0 %v1206_v0  ;;  %1129 = vmatpush3.bf16.msra.mxu1 %v1206_v0  ;;  %v104_v6 = vshrl.u32 %v1210_v3, 16  ;;  %v106_v7 = vshll.u32 %v1210_v3, 16  ;;  %v111_v8 = vshll.u32 %v1211_v4, 16  ;;  %v115_v9 = vshrl.u32 %v1211_v4, 16  ;;  %v1213_v10 = vld [vmem:[%s1498_s0 + $0x10] sm:$0xff]   ;;  %v1212_v19 = vld [vmem:[%s1497_s1] sm:$0xff]  }
   0x4   :  { %1082 = vmatprep.subr.bf16.mxu0 %v1207_v1  ;;  %1130 = vmatprep.subr.bf16.mxu1 %v1207_v1  ;;  %v1214_v11 = vld [vmem:[%s1498_s0 + $0x18] ss:$0 sps:$4 sm:$0x77]   ;;  %v525_v14 = vshrl.u32 %v1213_v10, 16  ;;  %v527_v15 = vshll.u32 %v1213_v10, 16  ;;  %v1215_v26 = vld [vmem:[%s1497_s1 + $0x8] sm:$0xff]  }
   0x5   :  { %v108_v12 = vrot.slane %v106_v7, 1  ;;  %v113_v13 = vrot.slane %v111_v8, 1  ;;  %v532_v16 = vshll.u32 %v1214_v11, 16  ;;  %v536_v17 = vshrl.u32 %v1214_v11, 16  ;;  %v277_v28 = vld [vmem:[%s1498_s0] sm:$0xc] }
   0x6   :  { %v529_v20 = vrot.slane %v527_v15, 1  ;;  %v1303_v29 = vld [vmem:[%s1498_s0 + $0x4] sm:$0xf]  ;;  %v1309_v31 = vld [vmem:[%s1498_s0 + $0x8] sm:$0x1f]   ;;  %v1216_v32 = vld [vmem:[%s1497_s1 + $0x10] sm:$0xff]  }
   0x7   :  { %1083 = vmatpush3.bf16.msra.mxu0 %v1207_v1  ;;  %1131 = vmatpush3.bf16.msra.mxu1 %v1207_v1  ;;  %v109_v18 = vor.u32 %v108_v12, %v104_v6  ;;  %v534_v21 = vrot.slane %v532_v16, 1  ;;  %v117_v23 = vor.u32 %v115_v9, %v113_v13  ;;  %v966_v30 = vcombine.low %v277_v28, %v1303_v29  ;;  %v1000_v33 = vld [vmem:[%s1498_s0 + $0x10] sm:$0xc]  ;;  %v1324_v38 = vld [vmem:[%s1498_s0 + $0x14] sm:$0xf]  ;;  %v1217_v41 = vld [vmem:[%s1497_s1 + $0x18] sm:$0xff]  }
   0x8   :  { %1084 = vmatprep.subr.bf16.mxu0 %v1208_v2  ;;  %1132 = vmatprep.subr.bf16.mxu1 %v1208_v2  ;;  %v530_v24 = vor.u32 %v529_v20, %v525_v14  ;;  %v310_v36 = vshrl.u32 %v1309_v31, 16  ;;  %v313_v37 = vshll.u32 %v1309_v31, 16  ;;  %v1004_v39 = vcombine.low %v1000_v33, %v1324_v38  ;;  %v1330_v40 = vld [vmem:[%s1498_s0 + $0x18] sm:$0x1f]   ;;  %v1218_v54 = vld [vmem:[%s1497_s1 + $0x40] sm:$0xff]   ;;  %v1221_v61 = vld [vmem:[%s1497_s1 + $0x48] sm:$0xff]  }
   0x9   :  { %v114_v22 = vsel %vm102_vm0, %v109_v18, %v113_v13  ;;  %v538_v25 = vor.u32 %v536_v17, %v534_v21  ;;  %v302_v34 = vshrl.u32 %v966_v30, 16  ;;  %v305_v35 = vshll.u32 %v966_v30, 16  ;;  %v1219_v55 = vld [vmem:[%s1498_s0 + $0x8] ss:$0 sps:$4 sm:$0x33]   ;;  %v1222_v0 = vld [vmem:[%s1497_s1 + $0x50] sm:$0xff]  }
   0xa   :  { %1088 = vmatprep.mubr.msk.bf16.mxu0 %vm142_vm1, %v114_v22  ;;  %v535_v27 = vsel %vm102_vm0, %v530_v24, %v534_v21  ;;  %v664_v44 = vshrl.u32 %v1004_v39, 16  ;;  %v667_v45 = vshll.u32 %v1004_v39, 16  ;;  %v672_v46 = vshrl.u32 %v1330_v40, 16  ;;  %v1220_v56 = vld [vmem:[%s1498_s0 + $0x18] ss:$0 sps:$4 sm:$0x33]  }
   0xb   :  { %1085 = vmatpush3.bf16.msra.mxu0 %v1208_v2  ;;  %1133 = vmatpush3.bf16.msra.mxu1 %v1208_v2  ;;  %v304_v42 = vrot.slane %v302_v34, 2  ;;  %v307_v43 = vrot.slane %v305_v35, 3  ;;  %v675_v47 = vshll.u32 %v1330_v40, 16  ;;  %v312_v48 = vrot.slane %v310_v36, 2  ;;  %v399_v1 = vld [vmem:[%s1498_s0] sm:$0x8] }
   0xc   :  { %1086 = vmatprep.subr.bf16.mxu0 %v1209_v5  ;;  %1134 = vmatprep.subr.bf16.mxu1 %v1209_v5  ;;  %v315_v49 = vrot.slane %v313_v37, 3  ;;  %v666_v50 = vrot.slane %v664_v44, 2  ;;  %v669_v51 = vrot.slane %v667_v45, 3  ;;  %v674_v52 = vrot.slane %v672_v46, 2  ;;  %v1008_v2 = vld [vmem:[%s1498_s0 + $0x10] sm:$0x8] }
   0xd   :  { %1136 = vmatprep.mubr.msk.bf16.mxu1 %vm142_vm1, %v535_v27  ;;  %v677_v53 = vrot.slane %v675_v47, 3  ;;  %v308_v57 = vor.u32 %v307_v43, %v304_v42  ;;  %v982_v4 = vcombine.low %v399_v1, %v1303_v29  ;;  %v1226_v6 = vld [vmem:[%s1497_s1 + $0x60] sm:$0xff]   ;;  %v414_v8 = vrot.slane %v1309_v31, 3  ;;  %v1229_v11 = vld [vmem:[%s1497_s1 + $0x68] sm:$0xff]   ;;  %v1230_v14 = vld [vmem:[%s1497_s1 + $0x70] sm:$0xff]  }
   0xe   :  { %v316_v58 = vor.u32 %v315_v49, %v312_v48  ;;  %v670_v59 = vor.u32 %v669_v51, %v666_v50  ;;  %v1231_v15 = vld [vmem:[%s1497_s1 + $0x78] sm:$0xff]   ;;  %v18_v16 = vlaneseq  ;;  %vm501_vm0 = vcmask 1043456  }
   0xf   :  { %1087 = vmatpush3.bf16.msra.mxu0 %v1209_v5  ;;  %1135 = vmatpush3.bf16.msra.mxu1 %v1209_v5  ;;  %v678_v60 = vor.u32 %v677_v53, %v674_v52  ;;  %v1009_v5 = vcombine.low %v1008_v2, %v1324_v38  ;;  %v413_v7 = vrot.slane %v982_v4, 3 }
  0x10   :  { %1092 = vmatprep.subr.bf16.mxu0 %v1212_v19  ;;  %1140 = vmatprep.subr.bf16.mxu1 %v1212_v19  ;;  %v317_v62 = vsel %vm300_vm2, %v308_v57, %v316_v58  ;;  %v1387_v17 = vshrl.u32 %v18_v16, 7 }
  0x11   :  { %v679_v63 = vsel %vm300_vm2, %v670_v59, %v678_v60  ;;  %v741_v9 = vrot.slane %v1009_v5, 3  ;;  %v415_v12 = vsel %vm412_vm3, %v413_v7, %v414_v8 }
  0x12   :  { %1089 = vmatmul.mubr.msk.bf16.vlgmr.msra.gmra.mrb[0].mxu0 %vm142_vm1, %v117_v23  ;;  %1137 = vmatmul.mubr.msk.bf16.vlgmr.msra.gmra.mrb[0].mxu1 %vm142_vm1, %v538_v25  ;;  %v21_v18 = vadd.s32 16, %v1387_v17  ;;  %v1395_v22 = vmul.u32.u64.low 3435973837, %v1387_v17  ;;  %v1396_v23 = vmul.u32.u64.high 3435973837, %v1387_v17, %v1395_v22 }
  0x13   :  { %1093 = vmatpush3.bf16.msra.mxu0 %v1212_v19  ;;  %1141 = vmatpush3.bf16.msra.mxu1 %v1212_v19  ;;  %v20_v19 = vadd.s32 8, %v1387_v17 }
  0x14   :  { %1094 = vmatprep.subr.bf16.mxu0 %v1215_v26  ;;  %1142 = vmatprep.subr.bf16.mxu1 %v1215_v26  ;;  %v1391_v20 = vmul.u32.u64.low 3435973837, %v21_v18  ;;  %v1392_v21 = vmul.u32.u64.high 3435973837, %v21_v18, %v1391_v20  ;;  %v28_v27 = vshrl.u32 %v1396_v23, 2 }
  0x15   :  { %1100 = vmatprep.mubr.msk.bf16.mxu0 %vm142_vm1, %v1210_v3  ;;  %1148 = vmatprep.mubr.msk.bf16.mxu1 %vm142_vm1, %v1213_v10  ;;  %v1223_v3 = vld [vmem:[%s1497_s1 + $0x58] sm:$0xff]   ;;  %v742_v10 = vrot.slane %v1330_v40, 3  ;;  %v1398_v24 = vmul.u32.u64.low 3435973837, %v20_v19  ;;  %v1399_v25 = vmul.u32.u64.high 3435973837, %v20_v19, %v1398_v24 }
  0x16   :  { %v29_v30 = vmul.u32 5, %v28_v27 }
  0x17   :  { %1095 = vmatpush3.bf16.msra.mxu0 %v1215_v26  ;;  %1143 = vmatpush3.bf16.msra.mxu1 %v1215_v26  ;;  %v743_v13 = vsel %vm412_vm3, %v741_v9, %v742_v10  ;;  %v50_v26 = vshrl.u32 %v1392_v21, 2  ;;  %v39_v28 = vshrl.u32 %v1399_v25, 2 }
  0x18   :  { %1096 = vmatprep.subr.bf16.mxu0 %v1216_v32  ;;  %1144 = vmatprep.subr.bf16.mxu1 %v1216_v32  ;;  %v30_v33 = vsub.s32 %v1387_v17, %v29_v30 }
  0x19   :  { %v51_v29 = vmul.u32 5, %v50_v26  ;;  %v40_v31 = vmul.u32 5, %v39_v28 }
  0x1a   :  { %vm55_vm6 = vcmp.ne.s32.totalorder %v30_v33, 0  ;;  %vm58_vm7 = vcmp.lt.s32.totalorder %v30_v33, 0  ;;  %v64_v36 = vadd.s32 5, %v30_v33 }
  0x1b   :  { %1097 = vmatpush3.bf16.msra.mxu0 %v1216_v32  ;;  %1145 = vmatpush3.bf16.msra.mxu1 %v1216_v32  ;;  %v52_v32 = vsub.s32 %v21_v18, %v51_v29  ;;  %v41_v34 = vsub.s32 %v20_v19, %v40_v31  ;;  %vm61_vm11 = vmand %vm58_vm7, %vm55_vm6 }
  0x1c   :  { %1098 = vmatprep.subr.bf16.mxu0 %v1217_v41  ;;  %1146 = vmatprep.subr.bf16.mxu1 %v1217_v41  ;;  %v67_v39 = vsel %vm61_vm11, %v64_v36, %v30_v33 }
  0x1d   :  { %vm57_vm4 = vcmp.ne.s32.totalorder %v52_v32, 0  ;;  %vm60_vm5 = vcmp.lt.s32.totalorder %v52_v32, 0  ;;  %vm56_vm8 = vcmp.ne.s32.totalorder %v41_v34, 0  ;;  %vm59_vm9 = vcmp.lt.s32.totalorder %v41_v34, 0 }
  0x1e   :  { %vm63_vm10 = vmand %vm60_vm5, %vm57_vm4  ;;  %v66_v35 = vadd.s32 5, %v52_v32  ;;  %v65_v37 = vadd.s32 5, %v41_v34  ;;  %vm1413_vm14 = vcmp.ne.s32.totalorder %v67_v39, 4 }
  0x1f   :  { %1099 = vmatpush3.bf16.msra.mxu0 %v1217_v41  ;;  %1147 = vmatpush3.bf16.msra.mxu1 %v1217_v41  ;;  %vm62_vm12 = vmand %vm59_vm9, %vm56_vm8 }
  0x20   :  { %1104 = vmatprep.subr.bf16.mxu0 %v1218_v54  ;;  %1152 = vmatprep.subr.bf16.mxu1 %v1218_v54  ;;  %v69_v38 = vsel %vm63_vm10, %v66_v35, %v52_v32  ;;  %v68_v40 = vsel %vm62_vm12, %v65_v37, %v41_v34 }
  0x21   :  { %vm1405_vm13 = vcmp.ne.s32.totalorder %v69_v38, 4  ;;  %vm1421_vm15 = vcmp.ne.s32.totalorder %v68_v40, 4 }
  0x22   :  { %1101 = vmatmul.mubr.msk.bf16.vlgmr.msra.gmra.mrb[0].mxu0 %vm142_vm1, %v1219_v55  ;;  %1149 = vmatmul.mubr.msk.bf16.vlgmr.msra.gmra.mrb[0].mxu1 %vm142_vm1, %v1220_v56 }
  0x23   :  { %1105 = vmatpush3.bf16.msra.mxu0 %v1218_v54  ;;  %1153 = vmatpush3.bf16.msra.mxu1 %v1218_v54 }
  0x24   :  { %1106 = vmatprep.subr.bf16.mxu0 %v1221_v61  ;;  %1154 = vmatprep.subr.bf16.mxu1 %v1221_v61 }
  0x25   :  { %1112 = vmatprep.mubr.msk.bf16.mxu0 %vm142_vm1, %v317_v62  ;;  %1160 = vmatprep.mubr.msk.bf16.mxu1 %vm142_vm1, %v679_v63 }
  0x27   :  { %1107 = vmatpush3.bf16.msra.mxu0 %v1221_v61  ;;  %1155 = vmatpush3.bf16.msra.mxu1 %v1221_v61 }
  0x28   :  { %1108 = vmatprep.subr.bf16.mxu0 %v1222_v0  ;;  %1156 = vmatprep.subr.bf16.mxu1 %v1222_v0 }
  0x2b   :  { %1109 = vmatpush3.bf16.msra.mxu0 %v1222_v0  ;;  %1157 = vmatpush3.bf16.msra.mxu1 %v1222_v0 }
  0x2c   :  { %1110 = vmatprep.subr.bf16.mxu0 %v1223_v3  ;;  %1158 = vmatprep.subr.bf16.mxu1 %v1223_v3 }
  0x2f   :  { %1111 = vmatpush3.bf16.msra.mxu0 %v1223_v3  ;;  %1159 = vmatpush3.bf16.msra.mxu1 %v1223_v3 }
  0x30   :  { %1116 = vmatprep.subr.bf16.mxu0 %v1226_v6  ;;  %1164 = vmatprep.subr.bf16.mxu1 %v1226_v6 }
  0x32   :  { %1113 = vmatmul.mubr.msk.bf16.vlgmr.msra.gmra.mrb[0].mxu0 %vm142_vm1, %v316_v58  ;;  %1161 = vmatmul.mubr.msk.bf16.vlgmr.msra.gmra.mrb[0].mxu1 %vm142_vm1, %v678_v60 }
  0x33   :  { %1117 = vmatpush3.bf16.msra.mxu0 %v1226_v6  ;;  %1165 = vmatpush3.bf16.msra.mxu1 %v1226_v6 }
  0x34   :  { %1118 = vmatprep.subr.bf16.mxu0 %v1229_v11  ;;  %1166 = vmatprep.subr.bf16.mxu1 %v1229_v11 }
  0x35   :  { %1124 = vmatprep.mubr.msk.bf16.mxu0 %vm142_vm1, %v415_v12  ;;  %1172 = vmatprep.mubr.msk.bf16.mxu1 %vm142_vm1, %v743_v13 }
  0x37   :  { %1119 = vmatpush3.bf16.msra.mxu0 %v1229_v11  ;;  %1167 = vmatpush3.bf16.msra.mxu1 %v1229_v11 }
  0x38   :  { %1120 = vmatprep.subr.bf16.mxu0 %v1230_v14  ;;  %1168 = vmatprep.subr.bf16.mxu1 %v1230_v14 }
  0x3b   :  { %1121 = vmatpush3.bf16.msra.mxu0 %v1230_v14  ;;  %1169 = vmatpush3.bf16.msra.mxu1 %v1230_v14 }
  0x3c   :  { %1122 = vmatprep.subr.bf16.mxu0 %v1231_v15  ;;  %1170 = vmatprep.subr.bf16.mxu1 %v1231_v15 }
  0x3f   :  { %1123 = vmatpush3.bf16.msra.mxu0 %v1231_v15  ;;  %1171 = vmatpush3.bf16.msra.mxu1 %v1231_v15 }
  0x42   :  { %1125 = vmatmul.mubr.msk.bf16.vlgmr.msra.gmra.mrb[0].mxu0 %vm142_vm1, %v414_v8  ;;  %1173 = vmatmul.mubr.msk.bf16.vlgmr.msra.gmra.mrb[0].mxu1 %vm142_vm1, %v742_v10 }
 0x115   :  { %v1409_v42 = vpop.f32.mrb[0].mxu0  ;;  %v1411_v43 = vpop.f32.mrb[0].mxu1 }
 0x116   :  { %v1417_v45 = vpop.f32.mrb[1].mxu0  ;;  %v1419_v46 = vpop.f32.mrb[1].mxu1  ;;  %v499_v50 = vsel %vm1405_vm13, %v1409_v42, 0.0  ;;  %v803_v51 = vsel %vm1405_vm13, %v1411_v43, 0.0 }
 0x117   :  { %v1127_v48 = vpop.f32.mrb[2].mxu0  ;;  %v1175_v49 = vpop.f32.mrb[2].mxu1  ;;  %v497_v54 = vsel %vm1413_vm14, %v1417_v45, 0.0  ;;  %v801_v55 = vsel %vm1413_vm14, %v1419_v46, 0.0  ;;  %v502_v60 = vsel %vm501_vm0, %v499_v50, 0.0  ;;  %v805_v61 = vsel %vm501_vm0, %v803_v51, 0.0 }
 0x118   :  { %v1431_v52 = vpop.f32.mrb[3].mxu0  ;;  %v1433_v53 = vpop.f32.mrb[3].mxu1 }
 0x119   :  { %v498_v56 = vsel %vm1421_vm15, %v1431_v52, 0.0  ;;  %v802_v57 = vsel %vm1421_vm15, %v1433_v53, 0.0 }
 0x11a   :  { %v500_v58 = vadd.f32 %v498_v56, %v497_v54  ;;  %v804_v59 = vadd.f32 %v802_v57, %v801_v55 }
 0x11c   :  { %v503_v62 = vadd.f32 %v502_v60, %v500_v58  ;;  %v806_v63 = vadd.f32 %v805_v61, %v804_v59  ;;  %v855_v60 = vld [vmem:[%s1499_s2] sm:$0x1]  ;;  %v865_v61 = vsub.s32 0, %v1387_v17 }
 0x11e   :  { %v504_v0 = vrot.slane %v503_v62, 4  ;;  %v807_v1 = vrot.slane %v806_v63, 4 }
 0x120   :  { %v505_v2 = vadd.f32 %v504_v0, %v503_v62  ;;  %v808_v3 = vadd.f32 %v807_v1, %v806_v63  ;;  %v859_v0 = vld [vmem:[%s1500_s3] sm:$0x1] }
 0x122   :  { %v506_v4 = vrot.slane %v505_v2, 2  ;;  %v809_v5 = vrot.slane %v808_v3, 2 }
 0x124   :  { %v507_v6 = vadd.f32 %v506_v4, %v505_v2  ;;  %v810_v7 = vadd.f32 %v809_v5, %v808_v3 }
 0x126   :  { %v508_v8 = vrot.slane %v507_v6, 1  ;;  %v811_v9 = vrot.slane %v810_v7, 1 }
 0x128   :  { %v509_v10 = vadd.f32 %v508_v8, %v507_v6  ;;  %v812_v11 = vadd.f32 %v811_v9, %v810_v7 }
 0x12a   :  { %v813_v12 = vadd.f32 %v812_v11, %v509_v10 }
 0x12c   :  { %v815_v13 = vmul.f32 0.03125, %v813_v12 }
 0x12e   :  { %v816_v14 = vsub.f32 %v1417_v45, %v815_v13  ;;  %v817_v15 = vsub.f32 %v1431_v52, %v815_v13  ;;  %v818_v16 = vsub.f32 %v1409_v42, %v815_v13  ;;  %v835_v18 = vsub.f32 %v1419_v46, %v815_v13 }
 0x12f   :  { %v836_v19 = vsub.f32 %v1433_v53, %v815_v13  ;;  %v837_v20 = vsub.f32 %v1411_v43, %v815_v13 }
 0x130   :  { %v819_v21 = vsel %vm1413_vm14, %v816_v14, 0.0  ;;  %v820_v22 = vsel %vm1421_vm15, %v817_v15, 0.0  ;;  %v821_v23 = vsel %vm1405_vm13, %v818_v16, 0.0  ;;  %v838_v24 = vsel %vm1413_vm14, %v835_v18, 0.0 }
 0x131   :  { %v822_v25 = vmul.f32 %v819_v21, %v819_v21  ;;  %v823_v26 = vmul.f32 %v820_v22, %v820_v22  ;;  %v824_v27 = vmul.f32 %v821_v23, %v821_v23  ;;  %v839_v28 = vsel %vm1421_vm15, %v836_v19, 0.0 }
 0x132   :  { %v840_v29 = vsel %vm1405_vm13, %v837_v20, 0.0  ;;  %v841_v30 = vmul.f32 %v838_v24, %v838_v24  ;;  %v842_v31 = vmul.f32 %v839_v28, %v839_v28 }
 0x133   :  { %v825_v32 = vadd.f32 %v823_v26, %v822_v25  ;;  %v826_v33 = vsel %vm501_vm0, %v824_v27, 0.0  ;;  %v843_v34 = vmul.f32 %v840_v29, %v840_v29 }
 0x134   :  { %v844_v35 = vadd.f32 %v842_v31, %v841_v30 }
 0x135   :  { %v827_v36 = vadd.f32 %v826_v33, %v825_v32  ;;  %v845_v37 = vsel %vm501_vm0, %v843_v34, 0.0 }
 0x136   :  { %v846_v38 = vadd.f32 %v845_v37, %v844_v35 }
 0x137   :  { %v828_v39 = vrot.slane %v827_v36, 4 }
 0x138   :  { %v847_v40 = vrot.slane %v846_v38, 4 }
 0x139   :  { %v829_v44 = vadd.f32 %v828_v39, %v827_v36 }
 0x13a   :  { %v848_v48 = vadd.f32 %v847_v40, %v846_v38 }
 0x13b   :  { %v830_v47 = vrot.slane %v829_v44, 2 }
 0x13c   :  { %v849_v49 = vrot.slane %v848_v48, 2 }
 0x13d   :  { %v831_v50 = vadd.f32 %v830_v47, %v829_v44 }
 0x13e   :  { %v850_v41 = vadd.f32 %v849_v49, %v848_v48 }
 0x13f   :  { %v832_v51 = vrot.slane %v831_v50, 1 }
 0x140   :  { %v851_v54 = vrot.slane %v850_v41, 1 }
 0x141   :  { %v833_v55 = vadd.f32 %v832_v51, %v831_v50 }
 0x142   :  { %v852_v56 = vadd.f32 %v851_v54, %v850_v41 }
 0x144   :  { %v853_v57 = vadd.f32 %v852_v56, %v833_v55 }
 0x146   :  { %v854_v58 = vmul.f32 0.03125, %v853_v57 }
 0x148   :  { %v856_v59 = vadd.f32 1e-05, %v854_v58 }
 0x14a   :  { %1234 = vrsqrt.f32 %v856_v59 }
 0x154   :  { %v1235_v62 = vpop.eup %1234 }
 0x155   :  { %v858_v63 = vmul.f32 %v1235_v62, %v855_v60 }
 0x157   :  { %v860_v1 = vmul.f32 %v858_v63, %v815_v13  ;;  %v866_v2 = vrot.slane %v858_v63, %v865_v61 }
 0x159   :  { %v861_v3 = vsub.f32 %v859_v0, %v860_v1  ;;  %v868_v4 = vmul.f32 %v866_v2, %v1417_v45  ;;  %v869_v5 = vmul.f32 %v866_v2, %v1431_v52  ;;  %v870_v6 = vmul.f32 %v1409_v42, %v866_v2 }
 0x15a   :  { %v902_v7 = vmul.f32 %v866_v2, %v1419_v46  ;;  %v903_v8 = vmul.f32 %v866_v2, %v1433_v53  ;;  %v904_v17 = vmul.f32 %v1411_v43, %v866_v2 }
 0x15b   :  { %v875_v9 = vrot.slane %v861_v3, %v865_v61 }
 0x15d   :  { %v877_v10 = vadd.f32 %v875_v9, %v868_v4  ;;  %v878_v11 = vadd.f32 %v875_v9, %v869_v5  ;;  %v879_v12 = vadd.f32 %v875_v9, %v870_v6  ;;  %v905_v14 = vadd.f32 %v902_v7, %v875_v9 }
 0x15e   :  { %v906_v13 = vadd.f32 %v903_v8, %v875_v9  ;;  %v907_v15 = vadd.f32 %v904_v17, %v875_v9 }
 0x15f   :  { %v880_v16 = vmul.f32 0.2, %v877_v10  ;;  %v881_v18 = vmul.f32 0.2, %v878_v11  ;;  %v882_v45 = vmul.f32 0.2, %v879_v12 }
 0x160   :  { %v908_v19 = vmul.f32 0.2, %v905_v14  ;;  %v909_v52 = vmul.f32 0.2, %v906_v13  ;;  %v910_v20 = vmul.f32 0.2, %v907_v15 }
 0x161   :  { %v883_v42 = vmax.f32 %v877_v10, %v880_v16  ;;  %v884_v21 = vmax.f32 %v878_v11, %v881_v18  ;;  %v885_v46 = vmax.f32 %v879_v12, %v882_v45 }
 0x162   :  { %v911_v22 = vmax.f32 %v905_v14, %v908_v19  ;;  %v912_v53 = vmax.f32 %v906_v13, %v909_v52  ;;  %v913_v23 = vmax.f32 %v907_v15, %v910_v20 }
 0x163   :  { %v1023_v43 = vpack.c.bf16 %v885_v46, %v885_v46  ;;  %v1030_v24 = vpack.c.bf16 %v884_v21, %v883_v42 }
 0x164   :  { %v1024_v25 = vpack.c.bf16 %v911_v22, %v911_v22  ;;  %v1025_v26 = vpack.c.bf16 %v912_v53, %v912_v53  ;;  %v1026_v27 = vpack.c.bf16 %v913_v23, %v913_v23 }
 0x165   :  { %1031 = vst [vmem:[%s1501_s4] sm:$0xff] %v1030_v24   ;;  %901 = vst [vmem:[%s1501_s4 + $0x8] sm:$0x3] %v1023_v43 }
 0x166   :  { %1018 = vst [vmem:[%s1501_s4 + $0xc] sm:$0xf] %v1024_v25  ;;  %1019 = vst [vmem:[%s1501_s4 + $0x10] sm:$0xf] %v1025_v26 }
 0x167   :  { %1020 = vst [vmem:[%s1501_s4 + $0x14] sm:$0x3] %v1026_v27 }

// kernel: _lambda_.5
= control target key start
LH: loop header
LB: loop body
LE: loop exit
PB: predicated region body
PF: predicated region fallthrough
CT: control target
= control target key end

     0   :  { %v1163_v0 = vmov 0.0   ;;  %vm1164_vm0 = vmmov 0   ;;  %vm494_vm5 = vcmask 1045504   ;;  %s1441_s1 = inlined_call_operand.vmem [shape: bf16[4,128,128], index: 1, kind: input, shape index: {}]   ;;  %s1442_s0 = inlined_call_operand.vmem [shape: bf16[2,16,128], index: 0, kind: input, shape index: {}]   ;;  %s1443_s2 = inlined_call_operand.vmem [shape: f32[1,128], index: 2, kind: input, shape index: {}]   ;;  %s1444_s3 = inlined_call_operand.vmem [shape: f32[1,128], index: 3, kind: input, shape index: {}]   ;;  %s1445_s4 = inlined_call_operand.vmem [shape: bf16[2,6,128], index: 4, kind: output, shape index: {}]  }
   0x1   :  { %935 = vmatprep.subr.bf16.mxu0 %v1163_v0  ;;  %1015 = vmatprep.subr.bf16.mxu1 %v1163_v0  ;;  %v1123_v1 = vld [vmem:[%s1441_s1 + $0x40] sm:$0xff]   ;;  %v1124_v2 = vld [vmem:[%s1441_s1 + $0x48] sm:$0xff]   ;;  %v1125_v3 = vld [vmem:[%s1441_s1 + $0x50] sm:$0xff]  }
   0x2   :  { %951 = vmatprep.mubr.msk.bf16.mxu0 %vm1164_vm0, %v1163_v0  ;;  %1031 = vmatprep.mubr.msk.bf16.mxu1 %vm1164_vm0, %v1163_v0  ;;  %v1126_v4 = vld [vmem:[%s1441_s1 + $0x58] sm:$0xff]   ;;  %v1127_v5 = vld [vmem:[%s1441_s1 + $0x60] sm:$0xff]   ;;  %v1133_v7 = vld [vmem:[%s1442_s0 + $0x8] ss:$0 sps:$4 sm:$0xff]  }
   0x3   :  { %936 = vmatpush3.bf16.msra.mxu0 %v1123_v1  ;;  %1016 = vmatpush3.bf16.msra.mxu1 %v1123_v1  ;;  %v1131_v6 = vld [vmem:[%s1442_s0] ss:$0 sps:$4 sm:$0xff]   ;;  %v1128_v8 = vld [vmem:[%s1441_s1 + $0x68] sm:$0xff]   ;;  %v512_v10 = vshll.u32 %v1133_v7, 16  ;;  %v1129_v11 = vld [vmem:[%s1441_s1 + $0x70] sm:$0xff]   ;;  %v510_v14 = vshrl.u32 %v1133_v7, 16 }
   0x4   :  { %937 = vmatprep.subr.bf16.mxu0 %v1163_v0  ;;  %1017 = vmatprep.subr.bf16.mxu1 %v1163_v0  ;;  %v78_v9 = vshll.u32 %v1131_v6, 16  ;;  %v76_v12 = vshrl.u32 %v1131_v6, 16  ;;  %v1130_v16 = vld [vmem:[%s1441_s1 + $0x78] sm:$0xff]   ;;  %v1132_v19 = vld [vmem:[%s1441_s1] sm:$0xff]   ;;  %v1134_v20 = vld [vmem:[%s1441_s1 + $0x8] sm:$0xff]  }
   0x5   :  { %v514_v15 = vrot.slane %v512_v10, 1  ;;  %v1135_v21 = vld [vmem:[%s1441_s1 + $0x10] sm:$0xff]   ;;  %v1136_v22 = vld [vmem:[%s1441_s1 + $0x18] sm:$0xff]   ;;  %v1137_v23 = vld [vmem:[%s1441_s1 + $0x20] sm:$0xff]  }
   0x6   :  { %v80_v13 = vrot.slane %v78_v9, 1  ;;  %v1138_v24 = vld [vmem:[%s1441_s1 + $0x28] sm:$0xff]   ;;  %v1139_v25 = vld [vmem:[%s1441_s1 + $0x30] sm:$0xff]   ;;  %v1140_v26 = vld [vmem:[%s1441_s1 + $0x38] sm:$0xff]  }
   0x7   :  { %938 = vmatpush3.bf16.msra.mxu0 %v1124_v2  ;;  %1018 = vmatpush3.bf16.msra.mxu1 %v1124_v2  ;;  %v515_v18 = vor.u32 %v514_v15, %v510_v14  ;;  %v37_v27 = vld [vmem:[%s1442_s0] sm:$0x7]  ;;  %v854_v29 = vld [vmem:[%s1442_s0 + $0x8] sm:$0x7]  ;;  %v1143_v31 = vld [vmem:[%s1441_s1 + $0x90] sm:$0xff]  }
   0x8   :  { %939 = vmatprep.subr.bf16.mxu0 %v1163_v0  ;;  %1019 = vmatprep.subr.bf16.mxu1 %v1163_v0  ;;  %v81_v17 = vor.u32 %v80_v13, %v76_v12  ;;  %v1141_v28 = vld [vmem:[%s1441_s1 + $0x80] sm:$0xff]   ;;  %v1142_v30 = vld [vmem:[%s1441_s1 + $0x88] sm:$0xff]   ;;  %v1144_v32 = vld [vmem:[%s1441_s1 + $0x98] sm:$0xff]  }
   0x9   :  { %v1145_v33 = vld [vmem:[%s1441_s1 + $0xa0] sm:$0xff]   ;;  %v857_v36 = vld [vmem:[%s1442_s0 + $0x8] sm:$0xe]  ;;  %v1331_v37 = vld [vmem:[%s1442_s0 + $0xc] sm:$0x1] }
   0xa   :  { %v259_v34 = vld [vmem:[%s1442_s0] sm:$0xe]  ;;  %v1323_v35 = vld [vmem:[%s1442_s0 + $0x4] sm:$0x1]  ;;  %v859_v39 = vcombine.low %v857_v36, %v1331_v37  ;;  %v1146_v40 = vld [vmem:[%s1441_s1 + $0xa8] sm:$0xff]  }
   0xb   :  { %940 = vmatpush3.bf16.msra.mxu0 %v1125_v3  ;;  %1020 = vmatpush3.bf16.msra.mxu1 %v1125_v3  ;;  %v820_v38 = vcombine.low %v259_v34, %v1323_v35  ;;  %v1147_v45 = vld [vmem:[%s1441_s1 + $0xb0] sm:$0xff]   ;;  %v1148_v50 = vld [vmem:[%s1441_s1 + $0xb8] sm:$0xff]   ;;  %v1150_v53 = vld [vmem:[%s1441_s1 + $0xc0] sm:$0xff]  }
   0xc   :  { %941 = vmatprep.subr.bf16.mxu0 %v1163_v0  ;;  %1021 = vmatprep.subr.bf16.mxu1 %v1163_v0  ;;  %v605_v43 = vshrl.u32 %v859_v39, 16  ;;  %v608_v44 = vshll.u32 %v859_v39, 16  ;;  %v1152_v54 = vld [vmem:[%s1441_s1 + $0xc8] sm:$0xff]   ;;  %v1153_v55 = vld [vmem:[%s1441_s1 + $0xd0] sm:$0xff]   ;;  %v1154_v56 = vld [vmem:[%s1441_s1 + $0xd8] sm:$0xff]  }
   0xd   :  { %v284_v41 = vshrl.u32 %v820_v38, 16  ;;  %v287_v42 = vshll.u32 %v820_v38, 16  ;;  %v1155_v57 = vld [vmem:[%s1441_s1 + $0xe0] sm:$0xff]   ;;  %v1156_v58 = vld [vmem:[%s1441_s1 + $0xe8] sm:$0xff]   ;;  %v1157_v59 = vld [vmem:[%s1441_s1 + $0xf0] sm:$0xff]  }
   0xe   :  { %v607_v48 = vrot.slane %v605_v43, 1  ;;  %v610_v49 = vrot.slane %v608_v44, 2  ;;  %v381_v60 = vld [vmem:[%s1442_s0] sm:$0xc]  ;;  %v860_v61 = vld [vmem:[%s1442_s0 + $0x8] sm:$0xc] }
   0xf   :  { %942 = vmatpush3.bf16.msra.mxu0 %v1126_v4  ;;  %1022 = vmatpush3.bf16.msra.mxu1 %v1126_v4  ;;  %v286_v46 = vrot.slane %v284_v41, 1  ;;  %v289_v47 = vrot.slane %v287_v42, 2  ;;  %v845_v62 = vcombine.low %v381_v60, %v1323_v35  ;;  %v861_v63 = vcombine.low %v860_v61, %v1331_v37  ;;  %v1158_v1 = vld [vmem:[%s1441_s1 + $0xf8] sm:$0xff]  }
  0x10   :  { %943 = vmatprep.subr.bf16.mxu0 %v1163_v0  ;;  %1023 = vmatprep.subr.bf16.mxu1 %v1163_v0  ;;  %v611_v52 = vor.u32 %v610_v49, %v607_v48  ;;  %v18_v4 = vlaneseq }
  0x11   :  { %v290_v51 = vor.u32 %v289_v47, %v286_v46  ;;  %v402_v2 = vrot.slane %v845_v62, 2  ;;  %v658_v3 = vrot.slane %v861_v63, 2  ;;  %v735_v62 = vld [vmem:[%s1443_s2] sm:$0x1] }
  0x13   :  { %944 = vmatpush3.bf16.msra.mxu0 %v1127_v5  ;;  %1024 = vmatpush3.bf16.msra.mxu1 %v1127_v5  ;;  %v1404_v5 = vshrl.u32 %v18_v4, 7 }
  0x14   :  { %945 = vmatprep.subr.bf16.mxu0 %v1163_v0  ;;  %1025 = vmatprep.subr.bf16.mxu1 %v1163_v0 }
  0x15   :  { %v1407_v6 = vmul.u32.u64.low 2863311531, %v1404_v5  ;;  %v1408_v7 = vmul.u32.u64.high 2863311531, %v1404_v5, %v1407_v6  ;;  %v745_v63 = vsub.s32 0, %v1404_v5 }
  0x17   :  { %946 = vmatpush3.bf16.msra.mxu0 %v1128_v8  ;;  %1026 = vmatpush3.bf16.msra.mxu1 %v1128_v8  ;;  %v26_v8 = vshrl.u32 %v1408_v7, 1 }
  0x18   :  { %947 = vmatprep.subr.bf16.mxu0 %v1163_v0  ;;  %1027 = vmatprep.subr.bf16.mxu1 %v1163_v0 }
  0x19   :  { %v27_v9 = vmul.u32 3, %v26_v8 }
  0x1b   :  { %948 = vmatpush3.bf16.msra.mxu0 %v1129_v11  ;;  %1028 = vmatpush3.bf16.msra.mxu1 %v1129_v11  ;;  %v28_v10 = vsub.s32 %v1404_v5, %v27_v9 }
  0x1c   :  { %949 = vmatprep.subr.bf16.mxu0 %v1163_v0  ;;  %1029 = vmatprep.subr.bf16.mxu1 %v1163_v0 }
  0x1d   :  { %vm31_vm1 = vcmp.ne.s32.totalorder %v28_v10, 0  ;;  %vm32_vm2 = vcmp.lt.s32.totalorder %v28_v10, 0 }
  0x1e   :  { %vm33_vm3 = vmand %vm32_vm2, %vm31_vm1 }
  0x1f   :  { %950 = vmatpush3.bf16.msra.mxu0 %v1130_v16  ;;  %1030 = vmatpush3.bf16.msra.mxu1 %v1130_v16 }
  0x20   :  { %955 = vmatprep.subr.bf16.mxu0 %v1163_v0  ;;  %1035 = vmatprep.subr.bf16.mxu1 %v1163_v0 }
  0x22   :  { %952 = vmatmul.mubr.bf16.vlgmr.msra.gmra.mrb[0].mxu0 %v81_v17  ;;  %1032 = vmatmul.mubr.bf16.vlgmr.msra.gmra.mrb[0].mxu1 %v515_v18 }
  0x23   :  { %956 = vmatpush3.bf16.msra.mxu0 %v1132_v19  ;;  %1036 = vmatpush3.bf16.msra.mxu1 %v1132_v19 }
  0x24   :  { %957 = vmatprep.subr.bf16.mxu0 %v1163_v0  ;;  %1037 = vmatprep.subr.bf16.mxu1 %v1163_v0 }
  0x25   :  { %971 = vmatprep.mubr.msk.bf16.mxu0 %vm1164_vm0, %v1163_v0  ;;  %1051 = vmatprep.mubr.msk.bf16.mxu1 %vm1164_vm0, %v1163_v0 }
  0x27   :  { %958 = vmatpush3.bf16.msra.mxu0 %v1134_v20  ;;  %1038 = vmatpush3.bf16.msra.mxu1 %v1134_v20 }
  0x28   :  { %959 = vmatprep.subr.bf16.mxu0 %v1163_v0  ;;  %1039 = vmatprep.subr.bf16.mxu1 %v1163_v0 }
  0x2b   :  { %960 = vmatpush3.bf16.msra.mxu0 %v1135_v21  ;;  %1040 = vmatpush3.bf16.msra.mxu1 %v1135_v21 }
  0x2c   :  { %961 = vmatprep.subr.bf16.mxu0 %v1163_v0  ;;  %1041 = vmatprep.subr.bf16.mxu1 %v1163_v0 }
  0x2f   :  { %962 = vmatpush3.bf16.msra.mxu0 %v1136_v22  ;;  %1042 = vmatpush3.bf16.msra.mxu1 %v1136_v22 }
  0x30   :  { %963 = vmatprep.subr.bf16.mxu0 %v1163_v0  ;;  %1043 = vmatprep.subr.bf16.mxu1 %v1163_v0 }
  0x33   :  { %964 = vmatpush3.bf16.msra.mxu0 %v1137_v23  ;;  %1044 = vmatpush3.bf16.msra.mxu1 %v1137_v23 }
  0x34   :  { %965 = vmatprep.subr.bf16.mxu0 %v1163_v0  ;;  %1045 = vmatprep.subr.bf16.mxu1 %v1163_v0 }
  0x37   :  { %966 = vmatpush3.bf16.msra.mxu0 %v1138_v24  ;;  %1046 = vmatpush3.bf16.msra.mxu1 %v1138_v24 }
  0x38   :  { %967 = vmatprep.subr.bf16.mxu0 %v1163_v0  ;;  %1047 = vmatprep.subr.bf16.mxu1 %v1163_v0 }
  0x3b   :  { %968 = vmatpush3.bf16.msra.mxu0 %v1139_v25  ;;  %1048 = vmatpush3.bf16.msra.mxu1 %v1139_v25 }
  0x3c   :  { %969 = vmatprep.subr.bf16.mxu0 %v1163_v0  ;;  %1049 = vmatprep.subr.bf16.mxu1 %v1163_v0 }
  0x3f   :  { %970 = vmatpush3.bf16.msra.mxu0 %v1140_v26  ;;  %1050 = vmatpush3.bf16.msra.mxu1 %v1140_v26 }
  0x40   :  { %975 = vmatprep.subr.bf16.mxu0 %v1163_v0  ;;  %1055 = vmatprep.subr.bf16.mxu1 %v1163_v0 }
  0x42   :  { %972 = vmatmul.mubr.bf16.vlgmr.msra.gmra.mrb[0].mxu0 %v37_v27  ;;  %1052 = vmatmul.mubr.bf16.vlgmr.msra.gmra.mrb[0].mxu1 %v854_v29 }
  0x43   :  { %976 = vmatpush3.bf16.msra.mxu0 %v1141_v28  ;;  %1056 = vmatpush3.bf16.msra.mxu1 %v1141_v28 }
  0x44   :  { %977 = vmatprep.subr.bf16.mxu0 %v1163_v0  ;;  %1057 = vmatprep.subr.bf16.mxu1 %v1163_v0 }
  0x45   :  { %991 = vmatprep.mubr.msk.bf16.mxu0 %vm1164_vm0, %v1163_v0  ;;  %1071 = vmatprep.mubr.msk.bf16.mxu1 %vm1164_vm0, %v1163_v0 }
  0x47   :  { %978 = vmatpush3.bf16.msra.mxu0 %v1142_v30  ;;  %1058 = vmatpush3.bf16.msra.mxu1 %v1142_v30 }
  0x48   :  { %979 = vmatprep.subr.bf16.mxu0 %v1163_v0  ;;  %1059 = vmatprep.subr.bf16.mxu1 %v1163_v0 }
  0x4b   :  { %980 = vmatpush3.bf16.msra.mxu0 %v1143_v31  ;;  %1060 = vmatpush3.bf16.msra.mxu1 %v1143_v31 }
  0x4c   :  { %981 = vmatprep.subr.bf16.mxu0 %v1163_v0  ;;  %1061 = vmatprep.subr.bf16.mxu1 %v1163_v0 }
  0x4f   :  { %982 = vmatpush3.bf16.msra.mxu0 %v1144_v32  ;;  %1062 = vmatpush3.bf16.msra.mxu1 %v1144_v32 }
  0x50   :  { %983 = vmatprep.subr.bf16.mxu0 %v1163_v0  ;;  %1063 = vmatprep.subr.bf16.mxu1 %v1163_v0 }
  0x53   :  { %984 = vmatpush3.bf16.msra.mxu0 %v1145_v33  ;;  %1064 = vmatpush3.bf16.msra.mxu1 %v1145_v33 }
  0x54   :  { %985 = vmatprep.subr.bf16.mxu0 %v1163_v0  ;;  %1065 = vmatprep.subr.bf16.mxu1 %v1163_v0 }
  0x57   :  { %986 = vmatpush3.bf16.msra.mxu0 %v1146_v40  ;;  %1066 = vmatpush3.bf16.msra.mxu1 %v1146_v40 }
  0x58   :  { %987 = vmatprep.subr.bf16.mxu0 %v1163_v0  ;;  %1067 = vmatprep.subr.bf16.mxu1 %v1163_v0 }
  0x5b   :  { %988 = vmatpush3.bf16.msra.mxu0 %v1147_v45  ;;  %1068 = vmatpush3.bf16.msra.mxu1 %v1147_v45 }
  0x5c   :  { %989 = vmatprep.subr.bf16.mxu0 %v1163_v0  ;;  %1069 = vmatprep.subr.bf16.mxu1 %v1163_v0 }
  0x5f   :  { %990 = vmatpush3.bf16.msra.mxu0 %v1148_v50  ;;  %1070 = vmatpush3.bf16.msra.mxu1 %v1148_v50 }
  0x60   :  { %995 = vmatprep.subr.bf16.mxu0 %v1163_v0  ;;  %1075 = vmatprep.subr.bf16.mxu1 %v1163_v0 }
  0x62   :  { %992 = vmatmul.mubr.bf16.vlgmr.msra.gmra.mrb[0].mxu0 %v290_v51  ;;  %1072 = vmatmul.mubr.bf16.vlgmr.msra.gmra.mrb[0].mxu1 %v611_v52 }
  0x63   :  { %996 = vmatpush3.bf16.msra.mxu0 %v1150_v53  ;;  %1076 = vmatpush3.bf16.msra.mxu1 %v1150_v53 }
  0x64   :  { %997 = vmatprep.subr.bf16.mxu0 %v1163_v0  ;;  %1077 = vmatprep.subr.bf16.mxu1 %v1163_v0 }
  0x65   :  { %1011 = vmatprep.mubr.msk.bf16.mxu0 %vm1164_vm0, %v1163_v0  ;;  %1091 = vmatprep.mubr.msk.bf16.mxu1 %vm1164_vm0, %v1163_v0 }
  0x67   :  { %998 = vmatpush3.bf16.msra.mxu0 %v1152_v54  ;;  %1078 = vmatpush3.bf16.msra.mxu1 %v1152_v54 }
  0x68   :  { %999 = vmatprep.subr.bf16.mxu0 %v1163_v0  ;;  %1079 = vmatprep.subr.bf16.mxu1 %v1163_v0 }
  0x6b   :  { %1000 = vmatpush3.bf16.msra.mxu0 %v1153_v55  ;;  %1080 = vmatpush3.bf16.msra.mxu1 %v1153_v55 }
  0x6c   :  { %1001 = vmatprep.subr.bf16.mxu0 %v1163_v0  ;;  %1081 = vmatprep.subr.bf16.mxu1 %v1163_v0 }
  0x6f   :  { %1002 = vmatpush3.bf16.msra.mxu0 %v1154_v56  ;;  %1082 = vmatpush3.bf16.msra.mxu1 %v1154_v56 }
  0x70   :  { %1003 = vmatprep.subr.bf16.mxu0 %v1163_v0  ;;  %1083 = vmatprep.subr.bf16.mxu1 %v1163_v0 }
  0x73   :  { %1004 = vmatpush3.bf16.msra.mxu0 %v1155_v57  ;;  %1084 = vmatpush3.bf16.msra.mxu1 %v1155_v57 }
  0x74   :  { %1005 = vmatprep.subr.bf16.mxu0 %v1163_v0  ;;  %1085 = vmatprep.subr.bf16.mxu1 %v1163_v0 }
  0x77   :  { %1006 = vmatpush3.bf16.msra.mxu0 %v1156_v58  ;;  %1086 = vmatpush3.bf16.msra.mxu1 %v1156_v58 }
  0x78   :  { %1007 = vmatprep.subr.bf16.mxu0 %v1163_v0  ;;  %1087 = vmatprep.subr.bf16.mxu1 %v1163_v0 }
  0x7b   :  { %1008 = vmatpush3.bf16.msra.mxu0 %v1157_v59  ;;  %1088 = vmatpush3.bf16.msra.mxu1 %v1157_v59 }
  0x7c   :  { %1009 = vmatprep.subr.bf16.mxu0 %v1163_v0  ;;  %1089 = vmatprep.subr.bf16.mxu1 %v1163_v0  ;;  %v34_v0 = vadd.s32 3, %v28_v10 }
  0x7e   :  { %v35_v11 = vsel %vm33_vm3, %v34_v0, %v28_v10 }
  0x7f   :  { %1010 = vmatpush3.bf16.msra.mxu0 %v1158_v1  ;;  %1090 = vmatpush3.bf16.msra.mxu1 %v1158_v1  ;;  %vm1412_vm4 = vcmp.ne.s32.totalorder %v35_v11, 2 }
  0x82   :  { %1012 = vmatmul.mubr.bf16.vlgmr.msra.gmra.mrb[0].mxu0 %v402_v2  ;;  %1092 = vmatmul.mubr.bf16.vlgmr.msra.gmra.mrb[0].mxu1 %v658_v3  ;;  %v739_v3 = vld [vmem:[%s1444_s3] sm:$0x1] }
 0x155   :  { %v486_v13 = vpop.f32.mrb[0].mxu0  ;;  %v694_v14 = vpop.f32.mrb[0].mxu1 }
 0x156   :  { %v493_v15 = vsel %vm1412_vm4, %v486_v13, 0.0  ;;  %v701_v16 = vsel %vm1412_vm4, %v694_v14, 0.0  ;;  %v1013_v17 = vpop.f32.mrb[1].mxu0  ;;  %v1093_v18 = vpop.f32.mrb[1].mxu1 }
 0x157   :  { %v495_v19 = vsel %vm494_vm5, %v493_v15, 0.0  ;;  %v702_v20 = vsel %vm494_vm5, %v701_v16, 0.0  ;;  %v489_v21 = vpop.f32.mrb[2].mxu0  ;;  %v697_v22 = vpop.f32.mrb[2].mxu1 }
 0x158   :  { %v496_v23 = vrot.slane %v495_v19, 4  ;;  %v703_v24 = vrot.slane %v702_v20, 4  ;;  %v1014_v25 = vpop.f32.mrb[3].mxu0  ;;  %v1094_v26 = vpop.f32.mrb[3].mxu1 }
 0x15a   :  { %v497_v27 = vadd.f32 %v496_v23, %v495_v19  ;;  %v704_v28 = vadd.f32 %v703_v24, %v702_v20 }
 0x15c   :  { %v498_v29 = vrot.slane %v497_v27, 2  ;;  %v705_v30 = vrot.slane %v704_v28, 2 }
 0x15e   :  { %v499_v31 = vadd.f32 %v498_v29, %v497_v27  ;;  %v706_v32 = vadd.f32 %v705_v30, %v704_v28 }
 0x160   :  { %v500_v33 = vrot.slane %v499_v31, 1  ;;  %v707_v34 = vrot.slane %v706_v32, 1 }
 0x162   :  { %v501_v35 = vadd.f32 %v500_v33, %v499_v31  ;;  %v708_v36 = vadd.f32 %v707_v34, %v706_v32 }
 0x164   :  { %v709_v37 = vadd.f32 %v708_v36, %v501_v35 }
 0x166   :  { %v711_v38 = vmul.f32 0.125, %v709_v37 }
 0x168   :  { %v712_v39 = vsub.f32 %v486_v13, %v711_v38  ;;  %v723_v40 = vsub.f32 %v694_v14, %v711_v38 }
 0x16a   :  { %v713_v41 = vsel %vm1412_vm4, %v712_v39, 0.0  ;;  %v724_v42 = vsel %vm1412_vm4, %v723_v40, 0.0 }
 0x16b   :  { %v714_v43 = vmul.f32 %v713_v41, %v713_v41  ;;  %v725_v44 = vmul.f32 %v724_v42, %v724_v42 }
 0x16d   :  { %v715_v45 = vsel %vm494_vm5, %v714_v43, 0.0  ;;  %v726_v46 = vsel %vm494_vm5, %v725_v44, 0.0 }
 0x16e   :  { %v716_v47 = vrot.slane %v715_v45, 4  ;;  %v727_v48 = vrot.slane %v726_v46, 4 }
 0x170   :  { %v717_v49 = vadd.f32 %v716_v47, %v715_v45  ;;  %v728_v50 = vadd.f32 %v727_v48, %v726_v46 }
 0x172   :  { %v718_v51 = vrot.slane %v717_v49, 2  ;;  %v729_v52 = vrot.slane %v728_v50, 2 }
 0x174   :  { %v719_v53 = vadd.f32 %v718_v51, %v717_v49  ;;  %v730_v54 = vadd.f32 %v729_v52, %v728_v50 }
 0x176   :  { %v720_v55 = vrot.slane %v719_v53, 1  ;;  %v731_v56 = vrot.slane %v730_v54, 1 }
 0x178   :  { %v721_v57 = vadd.f32 %v720_v55, %v719_v53  ;;  %v732_v58 = vadd.f32 %v731_v56, %v730_v54 }
 0x17a   :  { %v733_v59 = vadd.f32 %v732_v58, %v721_v57 }
 0x17c   :  { %v734_v60 = vmul.f32 0.125, %v733_v59 }
 0x17e   :  { %v736_v61 = vadd.f32 1e-05, %v734_v60 }
 0x180   :  { %1161 = vrsqrt.f32 %v736_v61 }
 0x18a   :  { %v1162_v1 = vpop.eup %1161 }
 0x18b   :  { %v738_v2 = vmul.f32 %v1162_v1, %v735_v62 }
 0x18d   :  { %v740_v4 = vmul.f32 %v738_v2, %v711_v38  ;;  %v746_v6 = vrot.slane %v738_v2, %v745_v63 }
 0x18f   :  { %v741_v7 = vsub.f32 %v739_v3, %v740_v4  ;;  %v748_v8 = vmul.f32 %v746_v6, %v486_v13  ;;  %v760_v9 = vmul.f32 %v746_v6, %v694_v14 }
 0x191   :  { %v753_v10 = vrot.slane %v741_v7, %v745_v63 }
 0x193   :  { %v755_v0 = vadd.f32 %v753_v10, %v748_v8  ;;  %v761_v11 = vadd.f32 %v760_v9, %v753_v10 }
 0x195   :  { %v756_v12 = vmul.f32 0.2, %v755_v0  ;;  %v762_v15 = vmul.f32 0.2, %v761_v11 }
 0x197   :  { %v757_v16 = vmax.f32 %v755_v0, %v756_v12  ;;  %v763_v17 = vmax.f32 %v761_v11, %v762_v15 }
 0x199   :  { %v758_v18 = vpack.c.bf16 %v757_v16, %v757_v16  ;;  %v764_v5 = vpack.c.bf16 %v763_v17, %v763_v17 }
 0x19b   :  { %759 = vst [vmem:[%s1445_s4] sm:$0x7] %v758_v18  ;;  %862 = vst [vmem:[%s1445_s4 + $0x4] sm:$0x7] %v764_v5 }

</bundles_post_ra>
